<compile_context>
chip_gen: v7x
topology: tpu7x:2x2x1
jax: 0.10.0
libtpu: 0.0.40
codegen_flags: <defaults>
</compile_context>

<pallas_src>
import math
import functools

import jax
import jax.numpy as jnp
import numpy as np
from jax.experimental import pallas as pl
from jax.experimental.pallas import tpu as pltpu


# ----------------------------- Pallas kernel ------------------------------- #

def _layernorm(v, w, b, eps=1e-12):
    # TF-style LayerNorm (epsilon inside the sqrt) — matches the spec's LayerNorm.
    u = jnp.mean(v, axis=-1, keepdims=True)
    s = jnp.mean((v - u) ** 2, axis=-1, keepdims=True)
    return (v - u) / jnp.sqrt(s + eps) * w + b


def resblock_stack_kernel(n_heads,
                          x_ref,
                          ln1_w, ln1_b,
                          w_q, b_q, w_k, b_k, w_v, b_v,
                          w_o, b_o,
                          ln2_w, ln2_b,
                          w_fc, b_fc, w_proj, b_proj,
                          o_ref,
                          x_scr):
    """One grid step = one (batch element, layer). x is carried in VMEM scratch."""
    L, E = x_scr.shape
    H = n_heads
    Dh = E // H
    layer = pl.program_id(1)

    # Initialize the resident activation at the first layer of this batch element.
    @pl.when(layer == 0)
    def _():
        x_scr[...] = x_ref[...].astype(jnp.float32)

    xs = x_scr[...]                                              # (L, E) fp32

    # ---- attention branch: x + out_proj(MHA(ln_1(x))) ----
    h1 = _layernorm(xs, ln1_w[...], ln1_b[...])
    # Weights are pre-transposed to (E, out); 1/sqrt(Dh) is folded into w_q/b_q.
    q = jnp.dot(h1, w_q[...], preferred_element_type=jnp.float32) + b_q[...]
    k = jnp.dot(h1, w_k[...], preferred_element_type=jnp.float32) + b_k[...]
    v = jnp.dot(h1, w_v[...], preferred_element_type=jnp.float32) + b_v[...]

    q3 = q.reshape(L, H, Dh)
    k3 = k.reshape(L, H, Dh)
    v3 = v.reshape(L, H, Dh)

    # Batched over heads: one score matmul, one softmax, one context matmul.
    s = jnp.einsum('lhd,mhd->hlm', q3, k3,
                   preferred_element_type=jnp.float32)           # (H, L, L)
    s = s - jnp.max(s, axis=-1, keepdims=True)
    p = jnp.exp(s)
    p = p * pl.reciprocal(jnp.sum(p, axis=-1, keepdims=True), approx=True)
    ctx = jnp.einsum('hlm,mhd->lhd', p, v3,
                     preferred_element_type=jnp.float32).reshape(L, E)

    attn = jnp.dot(ctx, w_o[...], preferred_element_type=jnp.float32) + b_o[...]
    x1 = xs + attn

    # ---- MLP branch: x + c_proj(QuickGELU(c_fc(ln_2(x)))) ----
    h2 = _layernorm(x1, ln2_w[...], ln2_b[...])
    fc = jnp.dot(h2, w_fc[...], preferred_element_type=jnp.float32) + b_fc[...]
    g = fc * jax.nn.sigmoid(1.702 * fc)                          # QuickGELU
    mlp = jnp.dot(g, w_proj[...], preferred_element_type=jnp.float32) + b_proj[...]
    x2 = x1 + mlp

    x_scr[...] = x2

    @pl.when(layer == pl.num_programs(1) - 1)
    def _():
        o_ref[...] = x2.astype(o_ref.dtype)


# ----------------------- parameter prep (host-side) ------------------------ #

def prepare_stacked_params(layer_params, n_heads):
    """Stack per-layer PyTorch-layout params along a leading layer axis,
    pre-transpose all weights to (in, out), split qkv, fold softmax scale."""
    E = layer_params[0]["ln1_w"].shape[-1]
    Dh = E // n_heads
    scale = 1.0 / math.sqrt(Dh)

    def stack(fn):
        return jnp.stack([fn(p) for p in layer_params], axis=0)

    return dict(
        ln1_w=stack(lambda p: p["ln1_w"]),
        ln1_b=stack(lambda p: p["ln1_b"]),
        w_q=stack(lambda p: p["w_qkv"][:E].T * scale),
        b_q=stack(lambda p: p["b_qkv"][:, :E] * scale),
        w_k=stack(lambda p: p["w_qkv"][E:2 * E].T),
        b_k=stack(lambda p: p["b_qkv"][:, E:2 * E]),
        w_v=stack(lambda p: p["w_qkv"][2 * E:].T),
        b_v=stack(lambda p: p["b_qkv"][:, 2 * E:]),
        w_o=stack(lambda p: p["w_o"].T),
        b_o=stack(lambda p: p["b_o"]),
        ln2_w=stack(lambda p: p["ln2_w"]),
        ln2_b=stack(lambda p: p["ln2_b"]),
        w_fc=stack(lambda p: p["w_fc"].T),
        b_fc=stack(lambda p: p["b_fc"]),
        w_proj=stack(lambda p: p["w_proj"].T),
        b_proj=stack(lambda p: p["b_proj"]),
    )


# ------------------------------- wrapper ------------------------------------ #

def temporal_transformer(x_lne, layer_params, n_heads, attn_mask=None):
    """PyTorch-equivalent forward. x_lne: (seq L, batch N, width E)."""
    # TODO(synk): additive attn_mask not implemented (module is used with attn_mask=None).
    assert attn_mask is None
    L, N, E = x_lne.shape
    F = 4 * E
    n_layers = len(layer_params)

    sp = prepare_stacked_params(layer_params, n_heads)
    x = jnp.transpose(x_lne, (1, 0, 2))                          # (N, L, E)

    # (name, per-layer 2D shape) in kernel argument order.
    w_shapes = [
        ("ln1_w", (1, E)), ("ln1_b", (1, E)),
        ("w_q", (E, E)), ("b_q", (1, E)),
        ("w_k", (E, E)), ("b_k", (1, E)),
        ("w_v", (E, E)), ("b_v", (1, E)),
        ("w_o", (E, E)), ("b_o", (1, E)),
        ("ln2_w", (1, E)), ("ln2_b", (1, E)),
        ("w_fc", (E, F)), ("b_fc", (1, F)),
        ("w_proj", (F, E)), ("b_proj", (1, E)),
    ]
    weight_args = [sp[name] for name, _ in w_shapes]
    weight_specs = [
        pl.BlockSpec((None,) + shape, lambda n, l: (l, 0, 0)) for _, shape in w_shapes
    ]

    out = pl.pallas_call(
        functools.partial(resblock_stack_kernel, n_heads),
        out_shape=jax.ShapeDtypeStruct((N, L, E), x.dtype),
        grid_spec=pltpu.PrefetchScalarGridSpec(
            num_scalar_prefetch=0,
            grid=(N, n_layers),
            in_specs=[pl.BlockSpec((None, L, E), lambda n, l: (n, 0, 0))]
                     + weight_specs,
            out_specs=pl.BlockSpec((None, L, E), lambda n, l: (n, 0, 0)),
            scratch_shapes=[pltpu.VMEM((L, E), jnp.float32)],
        ),
        compiler_params=pltpu.CompilerParams(
            dimension_semantics=("parallel", "arbitrary")),
    )(x, *weight_args)

    return jnp.transpose(out, (1, 0, 2))                         # back to (L, N, E)


# --------------------------- parameter init -------------------------------- #

def init_layer_params(key, width):
    E = width
    std = 0.02
    ks = jax.random.split(key, 8)
    rnd = lambda k, shape: (jax.random.normal(k, shape) * std).astype(jnp.float32)
    return dict(
        ln1_w=jnp.ones((1, E), jnp.float32),
        ln1_b=jnp.zeros((1, E), jnp.float32),
        w_qkv=rnd(ks[0], (3 * E, E)),            # nn.MultiheadAttention.in_proj_weight
        b_qkv=rnd(ks[1], (1, 3 * E)),
        w_o=rnd(ks[2], (E, E)),                  # out_proj
        b_o=rnd(ks[3], (1, E)),
        ln2_w=jnp.ones((1, E), jnp.float32),
        ln2_b=jnp.zeros((1, E), jnp.float32),
        w_fc=rnd(ks[4], (4 * E, E)),             # mlp.c_fc
        b_fc=rnd(ks[5], (1, 4 * E)),
        w_proj=rnd(ks[6], (E, 4 * E)),           # mlp.c_proj
        b_proj=rnd(ks[7], (1, E)),
    )


# --------------------------- pure-JAX reference ----------------------------- #

def ref_block(x_lne, p, n_heads):
    L, N, E = x_lne.shape
    H, Dh = n_heads, E // n_heads

    def ln(v, w, b):
        u = v.mean(-1, keepdims=True)
        s = ((v - u) ** 2).mean(-1, keepdims=True)
        return (v - u) / jnp.sqrt(s + 1e-12) * w.reshape(-1) + b.reshape(-1)

    hp = "highest"
    h = ln(x_lne, p["ln1_w"], p["ln1_b"])
    qkv = jnp.einsum("lne,fe->lnf", h, p["w_qkv"], precision=hp) + p["b_qkv"].reshape(-1)
    q, k, v = jnp.split(qkv, 3, axis=-1)
    q = q.reshape(L, N, H, Dh).transpose(1, 2, 0, 3) / math.sqrt(Dh)
    k = k.reshape(L, N, H, Dh).transpose(1, 2, 0, 3)
    v = v.reshape(L, N, H, Dh).transpose(1, 2, 0, 3)
    s = jnp.einsum("nhld,nhmd->nhlm", q, k, precision=hp)
    pa = jax.nn.softmax(s, axis=-1)
    ctx = jnp.einsum("nhlm,nhmd->nhld", pa, v, precision=hp)
    ctx = ctx.transpose(2, 0, 1, 3).reshape(L, N, E)
    attn = jnp.einsum("lne,fe->lnf", ctx, p["w_o"], precision=hp) + p["b_o"].reshape(-1)
    x1 = x_lne + attn
    h2 = ln(x1, p["ln2_w"], p["ln2_b"])
    fc = jnp.einsum("lne,fe->lnf", h2, p["w_fc"], precision=hp) + p["b_fc"].reshape(-1)
    g = fc * jax.nn.sigmoid(1.702 * fc)
    mlp = jnp.einsum("lnf,ef->lne", g, p["w_proj"], precision=hp) + p["b_proj"].reshape(-1)
    return x1 + mlp


def ref_transformer(x_lne, layer_params, n_heads):
    for p in layer_params:
        x_lne = ref_block(x_lne, p, n_heads)
    return x_lne


# --------------------------------- main ------------------------------------ #

if __name__ == "__main__":
    # TemporalTransformer(width=32, layers=2, heads=4), attn_mask=None
    WIDTH, LAYERS, HEADS = 32, 2, 4
    SEQ, BATCH = 8, 2

    key = jax.random.PRNGKey(0)
    kx, *kls = jax.random.split(key, 1 + LAYERS)
    x = jax.random.normal(kx, (SEQ, BATCH, WIDTH), dtype=jnp.float32)   # (L, N, E)
    params = [init_layer_params(kl, WIDTH) for kl in kls]

    out = temporal_transformer(x, params, HEADS)
    out = jax.block_until_ready(out)

    ref = ref_transformer(x, params, HEADS)
    assert out.shape == (SEQ, BATCH, WIDTH)
    np.testing.assert_allclose(np.asarray(out), np.asarray(ref), rtol=1e-2, atol=1e-3)

    print("KERNEL_OK")
</pallas_src>

<mosaic_0001>
module attributes {stable_mosaic.version = 11 : i64} {
  func.func @resblock_stack_kernel(%arg0: i32, %arg1: i32, %arg2: memref<1x8x32xf32, #tpu.memory_space<vmem>>, %arg3: memref<1x1x32xf32, #tpu.memory_space<vmem>>, %arg4: memref<1x1x32xf32, #tpu.memory_space<vmem>>, %arg5: memref<1x32x32xf32, #tpu.memory_space<vmem>>, %arg6: memref<1x1x32xf32, #tpu.memory_space<vmem>>, %arg7: memref<1x32x32xf32, #tpu.memory_space<vmem>>, %arg8: memref<1x1x32xf32, #tpu.memory_space<vmem>>, %arg9: memref<1x32x32xf32, #tpu.memory_space<vmem>>, %arg10: memref<1x1x32xf32, #tpu.memory_space<vmem>>, %arg11: memref<1x32x32xf32, #tpu.memory_space<vmem>>, %arg12: memref<1x1x32xf32, #tpu.memory_space<vmem>>, %arg13: memref<1x1x32xf32, #tpu.memory_space<vmem>>, %arg14: memref<1x1x32xf32, #tpu.memory_space<vmem>>, %arg15: memref<1x32x128xf32, #tpu.memory_space<vmem>>, %arg16: memref<1x1x128xf32, #tpu.memory_space<vmem>>, %arg17: memref<1x128x32xf32, #tpu.memory_space<vmem>>, %arg18: memref<1x1x32xf32, #tpu.memory_space<vmem>>, %arg19: memref<1x8x32xf32, #tpu.memory_space<vmem>>, %arg20: memref<8x32xf32, #tpu.memory_space<vmem>>) attributes {dimension_semantics = [#tpu.dimension_semantics<parallel>, #tpu.dimension_semantics<arbitrary>], iteration_bounds = array<i64: 2, 2>, scalar_prefetch = 0 : i64, scratch_operands = 1 : i64, tpu.core_type = #tpu.core_type<tc>, window_params = [{transform_indices = @transform_0, window_bounds = array<i64: 1, 8, 32>}, {transform_indices = @transform_1, window_bounds = array<i64: 1, 1, 32>}, {transform_indices = @transform_2, window_bounds = array<i64: 1, 1, 32>}, {transform_indices = @transform_3, window_bounds = array<i64: 1, 32, 32>}, {transform_indices = @transform_4, window_bounds = array<i64: 1, 1, 32>}, {transform_indices = @transform_5, window_bounds = array<i64: 1, 32, 32>}, {transform_indices = @transform_6, window_bounds = array<i64: 1, 1, 32>}, {transform_indices = @transform_7, window_bounds = array<i64: 1, 32, 32>}, {transform_indices = @transform_8, window_bounds = array<i64: 1, 1, 32>}, {transform_indices = @transform_9, window_bounds = array<i64: 1, 32, 32>}, {transform_indices = @transform_10, window_bounds = array<i64: 1, 1, 32>}, {transform_indices = @transform_11, window_bounds = array<i64: 1, 1, 32>}, {transform_indices = @transform_12, window_bounds = array<i64: 1, 1, 32>}, {transform_indices = @transform_13, window_bounds = array<i64: 1, 32, 128>}, {transform_indices = @transform_14, window_bounds = array<i64: 1, 1, 128>}, {transform_indices = @transform_15, window_bounds = array<i64: 1, 128, 32>}, {transform_indices = @transform_16, window_bounds = array<i64: 1, 1, 32>}, {transform_indices = @transform_17, window_bounds = array<i64: 1, 8, 32>}]} {
    %c0_i32 = arith.constant 0 : i32
    %0 = arith.cmpi eq, %arg1, %c0_i32 : i32
    %1 = arith.extui %0 : i1 to i32
    %c0_i32_0 = arith.constant 0 : i32
    %2 = arith.cmpi ne, %1, %c0_i32_0 : i32
    scf.if %2 {
      %c0_74 = arith.constant 0 : index
      %c0_75 = arith.constant 0 : index
      %c0_76 = arith.constant 0 : index
      %129 = vector.load %arg2[%c0_74, %c0_75, %c0_76] : memref<1x8x32xf32, #tpu.memory_space<vmem>>, vector<1x8x32xf32>
      %130 = vector.shape_cast %129 : vector<1x8x32xf32> to vector<8x32xf32>
      %c0_77 = arith.constant 0 : index
      %c0_78 = arith.constant 0 : index
      %131 = vector.load %arg20[%c0_77, %c0_78] : memref<8x32xf32, #tpu.memory_space<vmem>>, vector<8x32xf32>
      tpu.vector_store %arg20[%c0_77, %c0_78], %130 {strides = array<i32>} : memref<8x32xf32, #tpu.memory_space<vmem>>, vector<8x32xf32>,
    } else {
    }
    %c0 = arith.constant 0 : index
    %c0_1 = arith.constant 0 : index
    %3 = vector.load %arg20[%c0, %c0_1] : memref<8x32xf32, #tpu.memory_space<vmem>>, vector<8x32xf32>
    %c0_2 = arith.constant 0 : index
    %c0_3 = arith.constant 0 : index
    %c0_4 = arith.constant 0 : index
    %4 = vector.load %arg3[%c0_2, %c0_3, %c0_4] : memref<1x1x32xf32, #tpu.memory_space<vmem>>, vector<1x1x32xf32>
    %5 = vector.shape_cast %4 : vector<1x1x32xf32> to vector<1x32xf32>
    %c0_5 = arith.constant 0 : index
    %c0_6 = arith.constant 0 : index
    %c0_7 = arith.constant 0 : index
    %6 = vector.load %arg4[%c0_5, %c0_6, %c0_7] : memref<1x1x32xf32, #tpu.memory_space<vmem>>, vector<1x1x32xf32>
    %7 = vector.shape_cast %6 : vector<1x1x32xf32> to vector<1x32xf32>
    %cst = arith.constant dense<0.000000e+00> : vector<8xf32>
    %8 = vector.multi_reduction <add>, %3, %cst [1] : vector<8x32xf32> to vector<8xf32>
    %9 = vector.shape_cast %8 : vector<8xf32> to vector<8x1xf32>
    %cst_8 = arith.constant 3.200000e+01 : f32
    %10 = vector.broadcast %cst_8 : f32 to vector<8x1xf32>
    %11 = arith.divf %9, %10 : vector<8x1xf32>
    %12 = vector.broadcast %11 : vector<8x1xf32> to vector<8x32xf32>
    %13 = arith.subf %3, %12 : vector<8x32xf32>
    %14 = arith.mulf %13, %13 : vector<8x32xf32>
    %cst_9 = arith.constant dense<0.000000e+00> : vector<8xf32>
    %15 = vector.multi_reduction <add>, %14, %cst_9 [1] : vector<8x32xf32> to vector<8xf32>
    %16 = vector.shape_cast %15 : vector<8xf32> to vector<8x1xf32>
    %cst_10 = arith.constant 3.200000e+01 : f32
    %17 = vector.broadcast %cst_10 : f32 to vector<8x1xf32>
    %18 = arith.divf %16, %17 : vector<8x1xf32>
    %19 = vector.broadcast %11 : vector<8x1xf32> to vector<8x32xf32>
    %20 = arith.subf %3, %19 : vector<8x32xf32>
    %cst_11 = arith.constant 9.99999996E-13 : f32
    %21 = vector.broadcast %cst_11 : f32 to vector<8x1xf32>
    %22 = arith.addf %18, %21 : vector<8x1xf32>
    %23 = math.sqrt %22 : vector<8x1xf32>
    %24 = vector.broadcast %23 : vector<8x1xf32> to vector<8x32xf32>
    %25 = arith.divf %20, %24 : vector<8x32xf32>
    %26 = vector.broadcast %5 : vector<1x32xf32> to vector<8x32xf32>
    %27 = arith.mulf %25, %26 : vector<8x32xf32>
    %28 = vector.broadcast %7 : vector<1x32xf32> to vector<8x32xf32>
    %29 = arith.addf %27, %28 : vector<8x32xf32>
    %c0_12 = arith.constant 0 : index
    %c0_13 = arith.constant 0 : index
    %c0_14 = arith.constant 0 : index
    %30 = vector.load %arg5[%c0_12, %c0_13, %c0_14] : memref<1x32x32xf32, #tpu.memory_space<vmem>>, vector<1x32x32xf32>
    %31 = vector.shape_cast %30 : vector<1x32x32xf32> to vector<32x32xf32>
    %cst_15 = arith.constant dense<0.000000e+00> : vector<8x32xf32>
    %32 = tpu.matmul %29, %31, %cst_15 {dimension_numbers = #tpu.dot_dimension_numbers<[1], [0], [0], [1], [0, 0, 1, 1], [], []>} : vector<8x32xf32>, vector<32x32xf32>, vector<8x32xf32> -> vector<8x32xf32>
    %c0_16 = arith.constant 0 : index
    %c0_17 = arith.constant 0 : index
    %c0_18 = arith.constant 0 : index
    %33 = vector.load %arg6[%c0_16, %c0_17, %c0_18] : memref<1x1x32xf32, #tpu.memory_space<vmem>>, vector<1x1x32xf32>
    %34 = vector.shape_cast %33 : vector<1x1x32xf32> to vector<1x32xf32>
    %35 = vector.broadcast %34 : vector<1x32xf32> to vector<8x32xf32>
    %36 = arith.addf %32, %35 : vector<8x32xf32>
    %c0_19 = arith.constant 0 : index
    %c0_20 = arith.constant 0 : index
    %c0_21 = arith.constant 0 : index
    %37 = vector.load %arg7[%c0_19, %c0_20, %c0_21] : memref<1x32x32xf32, #tpu.memory_space<vmem>>, vector<1x32x32xf32>
    %38 = vector.shape_cast %37 : vector<1x32x32xf32> to vector<32x32xf32>
    %cst_22 = arith.constant dense<0.000000e+00> : vector<8x32xf32>
    %39 = tpu.matmul %29, %38, %cst_22 {dimension_numbers = #tpu.dot_dimension_numbers<[1], [0], [0], [1], [0, 0, 1, 1], [], []>} : vector<8x32xf32>, vector<32x32xf32>, vector<8x32xf32> -> vector<8x32xf32>
    %c0_23 = arith.constant 0 : index
    %c0_24 = arith.constant 0 : index
    %c0_25 = arith.constant 0 : index
    %40 = vector.load %arg8[%c0_23, %c0_24, %c0_25] : memref<1x1x32xf32, #tpu.memory_space<vmem>>, vector<1x1x32xf32>
    %41 = vector.shape_cast %40 : vector<1x1x32xf32> to vector<1x32xf32>
    %42 = vector.broadcast %41 : vector<1x32xf32> to vector<8x32xf32>
    %43 = arith.addf %39, %42 : vector<8x32xf32>
    %c0_26 = arith.constant 0 : index
    %c0_27 = arith.constant 0 : index
    %c0_28 = arith.constant 0 : index
    %44 = vector.load %arg9[%c0_26, %c0_27, %c0_28] : memref<1x32x32xf32, #tpu.memory_space<vmem>>, vector<1x32x32xf32>
    %45 = vector.shape_cast %44 : vector<1x32x32xf32> to vector<32x32xf32>
    %cst_29 = arith.constant dense<0.000000e+00> : vector<8x32xf32>
    %46 = tpu.matmul %29, %45, %cst_29 {dimension_numbers = #tpu.dot_dimension_numbers<[1], [0], [0], [1], [0, 0, 1, 1], [], []>} : vector<8x32xf32>, vector<32x32xf32>, vector<8x32xf32> -> vector<8x32xf32>
    %c0_30 = arith.constant 0 : index
    %c0_31 = arith.constant 0 : index
    %c0_32 = arith.constant 0 : index
    %47 = vector.load %arg10[%c0_30, %c0_31, %c0_32] : memref<1x1x32xf32, #tpu.memory_space<vmem>>, vector<1x1x32xf32>
    %48 = vector.shape_cast %47 : vector<1x1x32xf32> to vector<1x32xf32>
    %49 = vector.broadcast %48 : vector<1x32xf32> to vector<8x32xf32>
    %50 = arith.addf %46, %49 : vector<8x32xf32>
    %51 = vector.shape_cast %36 : vector<8x32xf32> to vector<8x4x8xf32>
    %52 = vector.shape_cast %43 : vector<8x32xf32> to vector<8x4x8xf32>
    %53 = vector.shape_cast %50 : vector<8x32xf32> to vector<8x4x8xf32>
    "tpu.trace_start"() <{level = 10 : i32, message = "lhd,mhd->hlm"}> : () -> ()
    %cst_33 = arith.constant dense<0.000000e+00> : vector<4x8x8xf32>
    %54 = tpu.matmul %51, %52, %cst_33 {dimension_numbers = #tpu.dot_dimension_numbers<[2], [2], [0], [0], [0, 1, 0, 0, 1, 0], [1], [1]>} : vector<8x4x8xf32>, vector<8x4x8xf32>, vector<4x8x8xf32> -> vector<4x8x8xf32>
    "tpu.trace_stop"() : () -> ()
    %cst_34 = arith.constant dense<0xFF800000> : vector<4x8xf32>
    %55 = vector.multi_reduction <maximumf>, %54, %cst_34 [2] : vector<4x8x8xf32> to vector<4x8xf32>
    %56 = vector.shape_cast %55 : vector<4x8xf32> to vector<4x8x1xf32>
    %57 = vector.broadcast %56 : vector<4x8x1xf32> to vector<4x8x8xf32>
    %58 = arith.subf %54, %57 : vector<4x8x8xf32>
    %59 = math.exp %58 : vector<4x8x8xf32>
    %cst_35 = arith.constant dense<0.000000e+00> : vector<4x8xf32>
    %60 = vector.multi_reduction <add>, %59, %cst_35 [2] : vector<4x8x8xf32> to vector<4x8xf32>
    %61 = vector.shape_cast %60 : vector<4x8xf32> to vector<4x8x1xf32>
    %62 = tpu.reciprocal %61 {approx = true} : vector<4x8x1xf32> -> vector<4x8x1xf32>
    %63 = vector.broadcast %62 : vector<4x8x1xf32> to vector<4x8x8xf32>
    %64 = arith.mulf %59, %63 : vector<4x8x8xf32>
    "tpu.trace_start"() <{level = 10 : i32, message = "hlm,mhd->lhd"}> : () -> ()
    %cst_36 = arith.constant dense<0.000000e+00> : vector<4x8x8xf32>
    %65 = tpu.matmul %53, %64, %cst_36 {dimension_numbers = #tpu.dot_dimension_numbers<[0], [2], [2], [1], [0, 1, 0, 2, 1, 1], [1], [0]>} : vector<8x4x8xf32>, vector<4x8x8xf32>, vector<4x8x8xf32> -> vector<4x8x8xf32>
    %66 = tpu.transpose %65, [2, 0, 1] : vector<4x8x8xf32> -> vector<8x4x8xf32>
    "tpu.trace_stop"() : () -> ()
    %67 = vector.shape_cast %66 : vector<8x4x8xf32> to vector<8x32xf32>
    %c0_37 = arith.constant 0 : index
    %c0_38 = arith.constant 0 : index
    %c0_39 = arith.constant 0 : index
    %68 = vector.load %arg11[%c0_37, %c0_38, %c0_39] : memref<1x32x32xf32, #tpu.memory_space<vmem>>, vector<1x32x32xf32>
    %69 = vector.shape_cast %68 : vector<1x32x32xf32> to vector<32x32xf32>
    %cst_40 = arith.constant dense<0.000000e+00> : vector<8x32xf32>
    %70 = tpu.matmul %67, %69, %cst_40 {dimension_numbers = #tpu.dot_dimension_numbers<[1], [0], [0], [1], [0, 0, 1, 1], [], []>} : vector<8x32xf32>, vector<32x32xf32>, vector<8x32xf32> -> vector<8x32xf32>
    %c0_41 = arith.constant 0 : index
    %c0_42 = arith.constant 0 : index
    %c0_43 = arith.constant 0 : index
    %71 = vector.load %arg12[%c0_41, %c0_42, %c0_43] : memref<1x1x32xf32, #tpu.memory_space<vmem>>, vector<1x1x32xf32>
    %72 = vector.shape_cast %71 : vector<1x1x32xf32> to vector<1x32xf32>
    %73 = vector.broadcast %72 : vector<1x32xf32> to vector<8x32xf32>
    %74 = arith.addf %70, %73 : vector<8x32xf32>
    %75 = arith.addf %3, %74 : vector<8x32xf32>
    %c0_44 = arith.constant 0 : index
    %c0_45 = arith.constant 0 : index
    %c0_46 = arith.constant 0 : index
    %76 = vector.load %arg13[%c0_44, %c0_45, %c0_46] : memref<1x1x32xf32, #tpu.memory_space<vmem>>, vector<1x1x32xf32>
    %77 = vector.shape_cast %76 : vector<1x1x32xf32> to vector<1x32xf32>
    %c0_47 = arith.constant 0 : index
    %c0_48 = arith.constant 0 : index
    %c0_49 = arith.constant 0 : index
    %78 = vector.load %arg14[%c0_47, %c0_48, %c0_49] : memref<1x1x32xf32, #tpu.memory_space<vmem>>, vector<1x1x32xf32>
    %79 = vector.shape_cast %78 : vector<1x1x32xf32> to vector<1x32xf32>
    %cst_50 = arith.constant dense<0.000000e+00> : vector<8xf32>
    %80 = vector.multi_reduction <add>, %75, %cst_50 [1] : vector<8x32xf32> to vector<8xf32>
    %81 = vector.shape_cast %80 : vector<8xf32> to vector<8x1xf32>
    %cst_51 = arith.constant 3.200000e+01 : f32
    %82 = vector.broadcast %cst_51 : f32 to vector<8x1xf32>
    %83 = arith.divf %81, %82 : vector<8x1xf32>
    %84 = vector.broadcast %83 : vector<8x1xf32> to vector<8x32xf32>
    %85 = arith.subf %75, %84 : vector<8x32xf32>
    %86 = arith.mulf %85, %85 : vector<8x32xf32>
    %cst_52 = arith.constant dense<0.000000e+00> : vector<8xf32>
    %87 = vector.multi_reduction <add>, %86, %cst_52 [1] : vector<8x32xf32> to vector<8xf32>
    %88 = vector.shape_cast %87 : vector<8xf32> to vector<8x1xf32>
    %cst_53 = arith.constant 3.200000e+01 : f32
    %89 = vector.broadcast %cst_53 : f32 to vector<8x1xf32>
    %90 = arith.divf %88, %89 : vector<8x1xf32>
    %91 = vector.broadcast %83 : vector<8x1xf32> to vector<8x32xf32>
    %92 = arith.subf %75, %91 : vector<8x32xf32>
    %cst_54 = arith.constant 9.99999996E-13 : f32
    %93 = vector.broadcast %cst_54 : f32 to vector<8x1xf32>
    %94 = arith.addf %90, %93 : vector<8x1xf32>
    %95 = math.sqrt %94 : vector<8x1xf32>
    %96 = vector.broadcast %95 : vector<8x1xf32> to vector<8x32xf32>
    %97 = arith.divf %92, %96 : vector<8x32xf32>
    %98 = vector.broadcast %77 : vector<1x32xf32> to vector<8x32xf32>
    %99 = arith.mulf %97, %98 : vector<8x32xf32>
    %100 = vector.broadcast %79 : vector<1x32xf32> to vector<8x32xf32>
    %101 = arith.addf %99, %100 : vector<8x32xf32>
    %c0_55 = arith.constant 0 : index
    %c0_56 = arith.constant 0 : index
    %c0_57 = arith.constant 0 : index
    %102 = vector.load %arg15[%c0_55, %c0_56, %c0_57] : memref<1x32x128xf32, #tpu.memory_space<vmem>>, vector<1x32x128xf32>
    %103 = vector.shape_cast %102 : vector<1x32x128xf32> to vector<32x128xf32>
    %cst_58 = arith.constant dense<0.000000e+00> : vector<8x128xf32>
    %104 = tpu.matmul %101, %103, %cst_58 {dimension_numbers = #tpu.dot_dimension_numbers<[1], [0], [0], [1], [0, 0, 1, 1], [], []>} : vector<8x32xf32>, vector<32x128xf32>, vector<8x128xf32> -> vector<8x128xf32>
    %c0_59 = arith.constant 0 : index
    %c0_60 = arith.constant 0 : index
    %c0_61 = arith.constant 0 : index
    %105 = vector.load %arg16[%c0_59, %c0_60, %c0_61] : memref<1x1x128xf32, #tpu.memory_space<vmem>>, vector<1x1x128xf32>
    %106 = vector.shape_cast %105 : vector<1x1x128xf32> to vector<1x128xf32>
    %107 = vector.broadcast %106 : vector<1x128xf32> to vector<8x128xf32>
    %108 = arith.addf %104, %107 : vector<8x128xf32>
    %cst_62 = arith.constant 1.702000e+00 : f32
    %109 = vector.broadcast %cst_62 : f32 to vector<8x128xf32>
    %110 = arith.mulf %109, %108 : vector<8x128xf32>
    %111 = arith.negf %110 : vector<8x128xf32>
    %112 = math.exp %111 : vector<8x128xf32>
    %cst_63 = arith.constant 1.000000e+00 : f32
    %113 = vector.broadcast %cst_63 : f32 to vector<8x128xf32>
    %114 = arith.addf %113, %112 : vector<8x128xf32>
    %115 = arith.divf %113, %114 : vector<8x128xf32>
    %116 = arith.mulf %108, %115 : vector<8x128xf32>
    %c0_64 = arith.constant 0 : index
    %c0_65 = arith.constant 0 : index
    %c0_66 = arith.constant 0 : index
    %117 = vector.load %arg17[%c0_64, %c0_65, %c0_66] : memref<1x128x32xf32, #tpu.memory_space<vmem>>, vector<1x128x32xf32>
    %118 = vector.shape_cast %117 : vector<1x128x32xf32> to vector<128x32xf32>
    %cst_67 = arith.constant dense<0.000000e+00> : vector<8x32xf32>
    %119 = tpu.matmul %116, %118, %cst_67 {dimension_numbers = #tpu.dot_dimension_numbers<[1], [0], [0], [1], [0, 0, 1, 1], [], []>} : vector<8x128xf32>, vector<128x32xf32>, vector<8x32xf32> -> vector<8x32xf32>
    %c0_68 = arith.constant 0 : index
    %c0_69 = arith.constant 0 : index
    %c0_70 = arith.constant 0 : index
    %120 = vector.load %arg18[%c0_68, %c0_69, %c0_70] : memref<1x1x32xf32, #tpu.memory_space<vmem>>, vector<1x1x32xf32>
    %121 = vector.shape_cast %120 : vector<1x1x32xf32> to vector<1x32xf32>
    %122 = vector.broadcast %121 : vector<1x32xf32> to vector<8x32xf32>
    %123 = arith.addf %119, %122 : vector<8x32xf32>
    %124 = arith.addf %75, %123 : vector<8x32xf32>
    %c0_71 = arith.constant 0 : index
    %c0_72 = arith.constant 0 : index
    %125 = vector.load %arg20[%c0_71, %c0_72] : memref<8x32xf32, #tpu.memory_space<vmem>>, vector<8x32xf32>
    tpu.vector_store %arg20[%c0_71, %c0_72], %124 {strides = array<i32>} : memref<8x32xf32, #tpu.memory_space<vmem>>, vector<8x32xf32>,
    %c1_i32 = arith.constant 1 : i32
    %126 = arith.cmpi eq, %arg1, %c1_i32 : i32
    %127 = arith.extui %126 : i1 to i32
    %c0_i32_73 = arith.constant 0 : i32
    %128 = arith.cmpi ne, %127, %c0_i32_73 : i32
    scf.if %128 {
      %c0_74 = arith.constant 0 : index
      %c0_75 = arith.constant 0 : index
      %c0_76 = arith.constant 0 : index
      %129 = vector.load %arg19[%c0_74, %c0_75, %c0_76] : memref<1x8x32xf32, #tpu.memory_space<vmem>>, vector<1x8x32xf32>
      %130 = vector.shape_cast %129 : vector<1x8x32xf32> to vector<8x32xf32>
      %131 = vector.shape_cast %124 : vector<8x32xf32> to vector<1x8x32xf32>
      tpu.vector_store %arg19[%c0_74, %c0_75, %c0_76], %131 {strides = array<i32>} : memref<1x8x32xf32, #tpu.memory_space<vmem>>, vector<1x8x32xf32>,
    } else {
    }
    return
  }
  func.func @transform_0(%arg0: i32, %arg1: i32) -> (i32, i32, i32) {
    %c0_i32 = arith.constant 0 : i32
    %c0_i32_0 = arith.constant 0 : i32
    %c0_i32_1 = arith.constant 0 : i32
    return %arg0, %c0_i32, %c0_i32_0 : i32, i32, i32
  }
  func.func @transform_1(%arg0: i32, %arg1: i32) -> (i32, i32, i32) {
    %c0_i32 = arith.constant 0 : i32
    %c0_i32_0 = arith.constant 0 : i32
    %c0_i32_1 = arith.constant 0 : i32
    return %arg1, %c0_i32, %c0_i32_0 : i32, i32, i32
  }
  func.func @transform_2(%arg0: i32, %arg1: i32) -> (i32, i32, i32) {
    %c0_i32 = arith.constant 0 : i32
    %c0_i32_0 = arith.constant 0 : i32
    %c0_i32_1 = arith.constant 0 : i32
    return %arg1, %c0_i32, %c0_i32_0 : i32, i32, i32
  }
  func.func @transform_3(%arg0: i32, %arg1: i32) -> (i32, i32, i32) {
    %c0_i32 = arith.constant 0 : i32
    %c0_i32_0 = arith.constant 0 : i32
    %c0_i32_1 = arith.constant 0 : i32
    return %arg1, %c0_i32, %c0_i32_0 : i32, i32, i32
  }
  func.func @transform_4(%arg0: i32, %arg1: i32) -> (i32, i32, i32) {
    %c0_i32 = arith.constant 0 : i32
    %c0_i32_0 = arith.constant 0 : i32
    %c0_i32_1 = arith.constant 0 : i32
    return %arg1, %c0_i32, %c0_i32_0 : i32, i32, i32
  }
  func.func @transform_5(%arg0: i32, %arg1: i32) -> (i32, i32, i32) {
    %c0_i32 = arith.constant 0 : i32
    %c0_i32_0 = arith.constant 0 : i32
    %c0_i32_1 = arith.constant 0 : i32
    return %arg1, %c0_i32, %c0_i32_0 : i32, i32, i32
  }
  func.func @transform_6(%arg0: i32, %arg1: i32) -> (i32, i32, i32) {
    %c0_i32 = arith.constant 0 : i32
    %c0_i32_0 = arith.constant 0 : i32
    %c0_i32_1 = arith.constant 0 : i32
    return %arg1, %c0_i32, %c0_i32_0 : i32, i32, i32
  }
  func.func @transform_7(%arg0: i32, %arg1: i32) -> (i32, i32, i32) {
    %c0_i32 = arith.constant 0 : i32
    %c0_i32_0 = arith.constant 0 : i32
    %c0_i32_1 = arith.constant 0 : i32
    return %arg1, %c0_i32, %c0_i32_0 : i32, i32, i32
  }
  func.func @transform_8(%arg0: i32, %arg1: i32) -> (i32, i32, i32) {
    %c0_i32 = arith.constant 0 : i32
    %c0_i32_0 = arith.constant 0 : i32
    %c0_i32_1 = arith.constant 0 : i32
    return %arg1, %c0_i32, %c0_i32_0 : i32, i32, i32
  }
  func.func @transform_9(%arg0: i32, %arg1: i32) -> (i32, i32, i32) {
    %c0_i32 = arith.constant 0 : i32
    %c0_i32_0 = arith.constant 0 : i32
    %c0_i32_1 = arith.constant 0 : i32
    return %arg1, %c0_i32, %c0_i32_0 : i32, i32, i32
  }
  func.func @transform_10(%arg0: i32, %arg1: i32) -> (i32, i32, i32) {
    %c0_i32 = arith.constant 0 : i32
    %c0_i32_0 = arith.constant 0 : i32
    %c0_i32_1 = arith.constant 0 : i32
    return %arg1, %c0_i32, %c0_i32_0 : i32, i32, i32
  }
  func.func @transform_11(%arg0: i32, %arg1: i32) -> (i32, i32, i32) {
    %c0_i32 = arith.constant 0 : i32
    %c0_i32_0 = arith.constant 0 : i32
    %c0_i32_1 = arith.constant 0 : i32
    return %arg1, %c0_i32, %c0_i32_0 : i32, i32, i32
  }
  func.func @transform_12(%arg0: i32, %arg1: i32) -> (i32, i32, i32) {
    %c0_i32 = arith.constant 0 : i32
    %c0_i32_0 = arith.constant 0 : i32
    %c0_i32_1 = arith.constant 0 : i32
    return %arg1, %c0_i32, %c0_i32_0 : i32, i32, i32
  }
  func.func @transform_13(%arg0: i32, %arg1: i32) -> (i32, i32, i32) {
    %c0_i32 = arith.constant 0 : i32
    %c0_i32_0 = arith.constant 0 : i32
    %c0_i32_1 = arith.constant 0 : i32
    return %arg1, %c0_i32, %c0_i32_0 : i32, i32, i32
  }
  func.func @transform_14(%arg0: i32, %arg1: i32) -> (i32, i32, i32) {
    %c0_i32 = arith.constant 0 : i32
    %c0_i32_0 = arith.constant 0 : i32
    %c0_i32_1 = arith.constant 0 : i32
    return %arg1, %c0_i32, %c0_i32_0 : i32, i32, i32
  }
  func.func @transform_15(%arg0: i32, %arg1: i32) -> (i32, i32, i32) {
    %c0_i32 = arith.constant 0 : i32
    %c0_i32_0 = arith.constant 0 : i32
    %c0_i32_1 = arith.constant 0 : i32
    return %arg1, %c0_i32, %c0_i32_0 : i32, i32, i32
  }
  func.func @transform_16(%arg0: i32, %arg1: i32) -> (i32, i32, i32) {
    %c0_i32 = arith.constant 0 : i32
    %c0_i32_0 = arith.constant 0 : i32
    %c0_i32_1 = arith.constant 0 : i32
    return %arg1, %c0_i32, %c0_i32_0 : i32, i32, i32
  }
  func.func @transform_17(%arg0: i32, %arg1: i32) -> (i32, i32, i32) {
    %c0_i32 = arith.constant 0 : i32
    %c0_i32_0 = arith.constant 0 : i32
    %c0_i32_1 = arith.constant 0 : i32
    return %arg0, %c0_i32, %c0_i32_0 : i32, i32, i32
  }
}

</mosaic_0001>

<bundles_post_ra>
// kernel: tpu_custom_call.1
= control target key start
LH: loop header
LB: loop body
LE: loop exit
PB: predicated region body
PF: predicated region fallthrough
CT: control target
= control target key end

     0   :  { %s4011_s0 = inlined_call_operand.hbm [shape: f32[2,8,32], index: 0, kind: input, shape index: {}]   ;;  %s4012_s1 = inlined_call_operand.vmem [shape: f32[2,1,32], index: 1, kind: input, shape index: {}]   ;;  %s4013_s2 = inlined_call_operand.vmem [shape: f32[2,1,32], index: 2, kind: input, shape index: {}]   ;;  %s4014_s3 = inlined_call_operand.vmem [shape: f32[2,32,32], index: 3, kind: input, shape index: {}]   ;;  %s4015_s4 = inlined_call_operand.vmem [shape: f32[2,1,32], index: 4, kind: input, shape index: {}]   ;;  %s4016_s5 = inlined_call_operand.vmem [shape: f32[2,32,32], index: 5, kind: input, shape index: {}]   ;;  %s4017_s6 = inlined_call_operand.vmem [shape: f32[2,1,32], index: 6, kind: input, shape index: {}]   ;;  %s4018_s7 = inlined_call_operand.vmem [shape: f32[2,32,32], index: 7, kind: input, shape index: {}]   ;;  %s4019_s8 = inlined_call_operand.vmem [shape: f32[2,1,32], index: 8, kind: input, shape index: {}]   ;;  %s4020_s9 = inlined_call_operand.vmem [shape: f32[2,32,32], index: 9, kind: input, shape index: {}]   ;;  %s4021_s10 = inlined_call_operand.vmem [shape: f32[2,1,32], index: 10, kind: input, shape index: {}]   ;;  %s4022_s11 = inlined_call_operand.vmem [shape: f32[2,1,32], index: 11, kind: input, shape index: {}]   ;;  %s4023_s12 = inlined_call_operand.vmem [shape: f32[2,1,32], index: 12, kind: input, shape index: {}]   ;;  %s4024_s13 = inlined_call_operand.vmem [shape: f32[2,32,128], index: 13, kind: input, shape index: {}]   ;;  %s4025_s14 = inlined_call_operand.vmem [shape: f32[2,1,128], index: 14, kind: input, shape index: {}]   ;;  %s4026_s15 = inlined_call_operand.vmem [shape: f32[2,128,32], index: 15, kind: input, shape index: {}]   ;;  %s4027_s16 = inlined_call_operand.vmem [shape: f32[2,1,32], index: 16, kind: input, shape index: {}]   ;;  %s4028_s17 = inlined_call_operand.hbm [shape: f32[2,8,32], index: 17, kind: output, shape index: {}]  }
   0x1   :  { %4046 = sst [smem:[#allocation23_spill]] %s4011_s0 }
   0x2   :  { %4047 = sst [smem:[#allocation24_spill]] %s4012_s1 }
   0x3   :  { %4048 = sst [smem:[#allocation25_spill]] %s4014_s3 }
   0x4   :  { %4049 = sst [smem:[#allocation26_spill]] %s4015_s4 }
   0x5   :  { %4050 = sst [smem:[#allocation27_spill]] %s4016_s5 }
   0x6   :  { %4051 = sst [smem:[#allocation28_spill]] %s4018_s7 }
   0x7   :  { %4052 = sst [smem:[#allocation29_spill]] %s4019_s8 }
   0x8   :  { %4053 = sst [smem:[#allocation30_spill]] %s4020_s9 }
   0x9   :  { %4054 = sst [smem:[#allocation31_spill]] %s4021_s10 }
   0xa   :  { %4055 = sst [smem:[#allocation32_spill]] %s4024_s13 }
   0xb   :  { %4056 = sst [smem:[#allocation33_spill]] %s4025_s14 }
   0xc   :  { %4057 = sst [smem:[#allocation34_spill]] %s4026_s15 }
   0xd   :  { %4058 = sst [smem:[#allocation35_spill]] %s4027_s16 }
   0xe   :  { %4059 = sst [smem:[#allocation36_spill]] %s4028_s17 }
   0xf   :  { %22 = vsyncpa [#allocation4], 0 }
  0x10   :  { %24 = vsyncpa [#allocation4 + $0x1], 0 }
  0x11   :  { %25 = vsyncpa [#allocation5], 0 }
  0x12   :  { %27 = vsyncpa [#allocation5 + $0x1], 0  ;;  %s3554_s24 = smov 0   ;;  %s3556_s25 = smov 0  }
  0x13   :  { %s3558_s26 = smov 0   ;;  %s3560_s27 = smov 0  }
  0x14   :  { %s3562_s28 = smov 0   ;;  %s3564_s29 = smov 0  }
  0x15   :  { %s3566_s0 = smov 0   ;;  %s3568_s30 = smov 0  }
  0x16 LB: > { %4060 = sst [smem:[#allocation9_spill]] %s3421_s24  ;;  %s2899_s18 = sadd.s32 4294967295, %s3449_s30   ;;  %s3449_s30 = sphi %s3568_s30, %s33_s30   ;;  %s3445_s0 = sphi %s3566_s0, %s4123_s0   ;;  %s3441_s29 = sphi %s3564_s29, %s4122_s29   ;;  %s3437_s28 = sphi %s3562_s28, %s4121_s28   ;;  %s3433_s27 = sphi %s3560_s27, %s4120_s27   ;;  %s3429_s26 = sphi %s3558_s26, %s4119_s26   ;;  %s3425_s25 = sphi %s3556_s25, %s4118_s25   ;;  %s3421_s24 = sphi %s3554_s24, %s4117_s24  }
  0x17   : > { %4061 = sst [smem:[#allocation10_spill]] %s3425_s25  ;;  %s2900_s19 = sadd.s32 4294967294, %s3449_s30  }
  0x18   : > { %4062 = sst [smem:[#allocation11_spill]] %s3429_s26  ;;  %s42_s1 = sadd.s32 1, %s3441_s29 }
  0x19   : > { %4063 = sst [smem:[#allocation12_spill]] %s3437_s28  ;;  %s45_s20 = sadd.s32 1, %s3445_s0 }
  0x1a   : > { %4064 = sst [smem:[#allocation13_spill]] %s3441_s29  ;;  %p43_p0 = scmp.ge.s32.totalorder %s42_s1, 2 }
  0x1b   : > { %4065 = sst [smem:[#allocation14_spill]] %s3445_s0  ;;  %s52_s21 = sadd.s32 1, %s3429_s26 }
  0x1c   : > { %4066 = sst [smem:[#allocation15_spill]] %s3449_s30  ;;  %p59_p1 = scmp.ne.s32.totalorder %s3429_s26, %s3425_s25 }
  0x1d   : > { %p60_p2 = scmp.eq.s32.totalorder %s3449_s30, 0  ;;  %s4125_s1 = smov (%p43_p0, %s42_s1), 0 }
  0x1e   : > { %4067 = sst [smem:[#allocation16_spill]] %s4125_s1  ;;  %s4127_s20 = smov (!%p43_p0, %s45_s20), %s3445_s0 }
  0x1f   : > { %p3605_p3 = por %p60_p2, %p59_p1  ;;  %p65_p4 = scmp.ne.s32.totalorder %s3425_s25, %s3421_s24 }
  0x20   : > { %p47_p5 = scmp.ge.s32.totalorder %s4127_s20, 2  ;;  %p66_p6 = scmp.eq.s32.totalorder %s2899_s18, 0 }
  0x21   : > { %p505_p7 = scmp.eq.s32.totalorder %s2899_s18, 3  ;;  %p511_p8 = scmp.eq.s32.totalorder %s2900_s19, 3 }
  0x22   : > { %s4129_s20 = smov (%p47_p5, %s4127_s20), 0  ;;  %p3613_p9 = por %p66_p6, %p65_p4 }
  0x23   : > { %4069 = sst [smem:[#allocation17_spill]] %s4129_s20  ;;  %p3617_p10 = por %p505_p7, %p59_p1 }
  0x24   : > { %s49_s29 = ssub.s32 %s3445_s0, %s4129_s20  ;;  %p3623_p11 = por %p511_p8, %p65_p4 }
  0x25   : > { %s4071_s1 = scalar_select %p3617_p10, 1, 0 }
  0x26   : > { %s4073_s24 = scalar_select %p3623_p11, 1, 0 }
  0x27   : > { %4072 = sst [smem:[#allocation18_spill]] %s4071_s1  ;;  %p50_p12 = scmp.eq.s32.totalorder %s49_s29, 0 }
  0x28   : > { %4074 = sst [smem:[#allocation19_spill]] %s4073_s24  ;;  %p3216_p13 = scmp.lt.s32.totalorder %s3449_s30, 4 }
  0x29   : > { %s531_s18 = sand.u32 1, %s3429_s26   ;;  %s2904_s28 = sshll.u32 %s3445_s0, 7 }
  0x2a   : > { %s3630_s19 = scalar_select %p50_p12, %s3429_s26, %s52_s21  }
  0x2b   : > { %s2903_s17 = sshll.u32 %s531_s18, 3  ;;  %s4076_s14 = sld [smem:[#allocation23_spill]] }
  0x2c   : > { %4075 = sst [smem:[#allocation20_spill]] %s3630_s19  ;;  %s535_s20 = scalar_lea.vmem [#allocation3], %s2903_s17 }
  0x2d   : > { %s542_s1 = sshll.u32 %s535_s20, 4  ;;  %p3642_p0 = pnand %p3216_p13, %p3605_p3  ;;  %s3638_s1 = int_to_ptr.vmem [resolvable:$true] %s542_s1 }
  0x2e   : > { %s532_s15 = scalar_lea.sflag [#allocation4], %s531_s18 }
  0x2f   : > { %p3323_p5 = pneg %p3642_p0 }
  0x31   : > { %s3636_s13 = scalar_lea.hbm %s4076_s14, %s2904_s28  ;;  %s3326_s20 = scalar_lea.hbm %s4076_s14, 256 }
  0x32   : > { %s3321_s16 = scalar_lea.hbm %s3636_s13, 128  ;;  %p3327_p3 = scmp.lt.u32.totalorder %s3636_s13, %s4076_s14 }
  0x33   : > { %p3322_p4 = scmp.ne.s32.totalorder %s3636_s13, %s3321_s16  ;;  %p3328_p8 = scmp.lt.u32.totalorder %s3326_s20, %s3321_s16 }
  0x34   : > { %p3330_p13 = scmp.lt.u32.totalorder %s3321_s16, %s3636_s13 }
  0x35   : > { %p3324_p6 = pnand %p3323_p5, %p3322_p4  ;;  %p3329_p12 = por %p3328_p8, %p3327_p3 }
  0x37   : > { %p3325_p7 = pneg %p3324_p6  ;;  %p3331_p1 = por %p3330_p13, %p3329_p12 }
  0x39   : > { %p3332_p2 = pnand %p3331_p1, %p3325_p7 }
  0x3b   : > { %3335 = shalt.err (!%p3332_p2)
}
  0x3c   : > { %s3336_s18 = scalar_lea.vmem %s3638_s1, 128  ;;  %s3451_s17 = smov [#allocation3]  }
  0x3d   : > { %p3337_p4 = scmp.ne.s32.totalorder %s3638_s1, %s3336_s18  ;;  %s3341_s28 = sshll.u32 %s3451_s17, 4  ;;  %s3342_s28 = int_to_ptr.vmem [resolvable:$false] %s3341_s28 }
  0x3e   : > { %s3343_s21 = scalar_lea.vmem %s3342_s28, 256  ;;  %p3344_p10 = scmp.lt.s32.totalorder %s3638_s1, %s3342_s28 }
  0x3f   : > { %p3339_p6 = pnand %p3337_p4, %p3323_p5  ;;  %p3345_p3 = scmp.lt.s32.totalorder %s3343_s21, %s3336_s18 }
  0x41   : > { %p3340_p11 = pneg %p3339_p6  ;;  %p3346_p8 = por %p3345_p3, %p3344_p10 }
  0x43   : > { %p3347_p12 = pnand %p3346_p8, %p3340_p11 }
  0x45   : > { %3350 = shalt.err (!%p3347_p12)
}
  0x46   : > { %3211 = dma.hbm_to_vmem [thread:$0]  (!%p3642_p0), %s3636_s13, 128, %s3638_s1, %s532_s15  }
  0x47   : > { %p4078_p1 = scmp.lt.s32.totalorder %s3449_s30, 5  ;;  %p4079_p2 = scmp.ge.s32.totalorder %s3449_s30, 1 }
  0x49   : > { %p656_p5 = pnand %p4079_p2, %p4078_p1 }
  0x4b   : > { %659 = sbr.rel (%p656_p5) target bundleno = 2973 (0xb9d), region = 88 }
  0x52   : > { %s3678_s16 = sand.u32 1, %s3425_s25  }
  0x53   : > { %4080 = sst [smem:[#allocation21_spill]] %s3678_s16  ;;  %s2906_s20 = sshll.u32 %s3678_s16, 3 }
  0x54   : > { %s662_s22 = scalar_lea.sflag [#allocation4], %s3678_s16  ;;  %s665_s18 = scalar_lea.vmem [#allocation3], %s2906_s20 }
  0x55   : > { %3412 = dma.done.wait (%p3613_p9), %s662_s22, 128  }
  0x56   : > { %3414 = vsyncadd (%p3613_p9), %s662_s22, 4294967168  ;;  %p776_p10 = scmp.lt.s32.totalorder %s3433_s27, 1  ;;  %s4083_s3 = sld [smem:[#allocation25_spill]] }
  0x57   : > { %s4084_s5 = sld [smem:[#allocation27_spill]]  ;;  %s4085_s7 = sld [smem:[#allocation28_spill]] }
  0x58   : > { %s3688_s13 = scalar_select %p776_p10, %s3433_s27, 1 }
  0x59   : > { %s4087_s9 = sld [smem:[#allocation30_spill]]  ;;  %s4090_s0 = sld [smem:[#allocation32_spill]] }
  0x5a   : > { %s2956_s22 = sshll.u32 %s3688_s13, 5  ;;  %s2961_s8 = sshll.u32 %s3688_s13, 7 }
  0x5b   : > { %s4093_s17 = sld [smem:[#allocation35_spill]]  ;;  %s3762_s28 = scalar_lea.vmem [#allocation6], %s2906_s20 }
  0x5c   : > { %s3706_s26 = scalar_lea.vmem %s4083_s3, %s2956_s22  ;;  %p2920_p9 = scmp.ne.s32.totalorder %s3433_s27, 0 }
  0x5d   : > { %s3711_s30 = scalar_lea.vmem %s4084_s5, %s2956_s22  ;;  %s3720_s16 = scalar_lea.vmem %s4085_s7, %s2956_s22  ;;  %v840_v0 = vld [vmem:[%s665_s18] sm:$0xff] (!%p2920_p9)  ;;  %vm841_vm0 = vcmask (!%p2920_p9), 261120  }
  0x5e   : > { %s819_s7 = scalar_lea.vmem %s4023_s12, %s3688_s13  ;;  %s4092_s5 = sld [smem:[#allocation34_spill]]  ;;  %842 = vst.msk [vmem:[#allocation2] sm:$0xff] (!%p2920_p9), %vm841_vm0, %v840_v0 }
  0x5f   : > { %s3729_s3 = scalar_lea.vmem %s4087_s9, %s2956_s22  ;;  %s3746_s19 = scalar_lea.vmem %s4090_s0, %s2956_s22 }
  0x60   : > { %4088 = sst [smem:[#allocation22_spill]] %s3729_s3  ;;  %s4091_s9 = sld [smem:[#allocation33_spill]] }
  0x61   : > { %s835_s21 = scalar_lea.vmem %s4093_s17, %s3688_s13  ;;  %839 = sbr.rel (%p2920_p9) target bundleno = 104 (0x68), region = 96 }
  0x64   : > { %s3756_s10 = scalar_lea.vmem %s4092_s5, %s2961_s8 }
  0x66   : > { %s827_s3 = scalar_lea.vmem %s4091_s9, %s3688_s13 }
  0x68 PF: > { %v3765_v1 = vld [vmem:[#allocation2] sm:$0xff]  ;;  %vm846_vm1 = vcmask 261120   ;;  %v883_v9 = vld [vmem:[%s3706_s26 + $0x8] sm:$0xff]  ;;  %v884_v10 = vld [vmem:[%s3706_s26 + $0x10] sm:$0xff]  ;;  %v3452_v11 = vmov 0.0|0.0   ;;  %vm3453_vm2 = vmmov 0   ;;  %s4096_s18 = scalar_lea.vmem %s4013_s2, %s3688_s13  ;;  %s4097_s22 = scalar_lea.vmem %s4017_s6, %s3688_s13 }
  0x69   : > { %v847_v2 = vsel %vm846_vm1, %v3765_v1, 0.0  ;;  %v882_v8 = vld [vmem:[%s3706_s26] sm:$0xff]  ;;  %3150 = vmatprep.subr.bf16.mxu1 %v3452_v11  ;;  %v885_v13 = vld [vmem:[%s3706_s26 + $0x18] sm:$0xff]  ;;  %v3454_v14 = vmov 0.0   ;;  %s4094_s8 = sld [smem:[#allocation24_spill]]  ;;  %v967_v28 = vld [vmem:[%s3711_s30 + $0x8] sm:$0xff] }
  0x6a   : > { %848 = vadd.xlane.f32.xlu0 %v847_v2  ;;  %v3151_v12 = vpack.c.bf16 %v883_v9, %v882_v8  ;;  %3028 = vmatprep.mubr.msk.f32.mxu1 %vm3453_vm2, %v3454_v14  ;;  %v3154_v15 = vpack.c.bf16 %v885_v13, %v884_v10  ;;  %v966_v27 = vld [vmem:[%s3711_s30] sm:$0xff]  ;;  %v968_v33 = vld [vmem:[%s3711_s30 + $0x10] sm:$0xff]  ;;  %v969_v34 = vld [vmem:[%s3711_s30 + $0x18] sm:$0xff]  ;;  %s3455_s17 = smov 104   ;;  %s3456_s14 = smov 120   ;;  %vm1283_vm5 = vcmask 64512  }
  0x6b   : > { %3063 = vmatprep.subr.mxu0 %v3454_v14  ;;  %3065 = vmatprep.mubr.msk.f32.mxu0 %vm3453_vm2, %v3454_v14  ;;  %v2922_v29 = vld [vmem:[%s4096_s18] ss:$0 sm:$0xff]  ;;  %v3157_v31 = vpack.c.bf16 %v967_v28, %v966_v27  ;;  %v3160_v35 = vpack.c.bf16 %v969_v34, %v968_v33  ;;  %v1048_v37 = vld [vmem:[%s3720_s16 + $0x8] sm:$0xff]  ;;  %v1049_v39 = vld [vmem:[%s3720_s16 + $0x10] sm:$0xff]  ;;  %s4098_s29 = sld [smem:[#allocation26_spill]]  ;;  %s3457_s25 = smov 112  }
  0x6c   : > { %3152 = vmatpush3.bf16.msra.mxu1 %v3151_v12  ;;  %v1047_v36 = vld [vmem:[%s3720_s16] sm:$0xff]  ;;  %v1050_v40 = vld [vmem:[%s3720_s16 + $0x18] sm:$0xff]  ;;  %s4100_s4 = sld [smem:[#allocation29_spill]]  ;;  %s3461_s26 = smov 8   ;;  %vm2325_vm6 = vcmask 130048   ;;  %vm2327_vm7 = vcmask 195584  }
  0x6d   : > { %3153 = vmatprep.subr.bf16.mxu1 %v3452_v11  ;;  %v3163_v38 = vpack.c.bf16 %v1048_v37, %v1047_v36  ;;  %v3166_v41 = vpack.c.bf16 %v1050_v40, %v1049_v39  ;;  %v2925_v44 = vld [vmem:[%s4097_s22] ss:$0 sm:$0xff]  ;;  %s3462_s20 = smov 24   ;;  %s4103_s16 = sld [smem:[#allocation31_spill]] }
  0x6e   : > { %p2951_p11 = scmp.ne.s32.totalorder %s3433_s27, 1 }
  0x6f   : > { %s4095_s9 = scalar_lea.vmem %s4094_s8, %s3688_s13  ;;  %s4102_s8 = sld [smem:[#allocation22_spill]] }
  0x70   : > { %3155 = vmatpush3.bf16.msra.mxu1 %v3154_v15  ;;  %v2921_v25 = vld [vmem:[%s4095_s9] ss:$0 sm:$0xff]  ;;  %s3460_s9 = smov 16  }
  0x71   : > { %3156 = vmatprep.subr.bf16.mxu1 %v3452_v11  ;;  %s4099_s24 = scalar_lea.vmem %s4098_s29, %s3688_s13 }
  0x72   : > { %v2923_v48 = vld [vmem:[%s4099_s24] ss:$0 sm:$0xff]  ;;  %s4101_s5 = scalar_lea.vmem %s4100_s4, %s3688_s13 }
  0x73   : > { %v2927_v2 = vld [vmem:[%s4101_s5] ss:$0 sm:$0xff]  ;;  %s4104_s22 = scalar_lea.vmem %s4103_s16, %s3688_s13 }
  0xf7   : > { %v849_v3 = vpop.xlane.xlu0 %848 }
  0xf8   : > { %v851_v4 = vmul.f32 0.03125, %v849_v3 }
  0xfa   : > { %v852_v5 = vsub.f32 %v3765_v1, %v851_v4 }
  0xfc   : > { %v853_v6 = vmul.f32 %v852_v5, %v852_v5 }
  0xfe   : > { %v854_v7 = vsel %vm846_vm1, %v853_v6, 0.0 }
  0xff   : > { %855 = vadd.xlane.f32.xlu0 %v854_v7 }
 0x18c   : > { %v856_v16 = vpop.xlane.xlu0 %855 }
 0x18d   : > { %v857_v17 = vmul.f32 0.03125, %v856_v16 }
 0x18f   : > { %v858_v18 = vadd.f32 1e-12, %v857_v17 }
 0x191   : > { %3293 = vrsqrt.f32 %v858_v18  ;;  %vm861_vm3 = vcmp.eq.f32.partialorder %v858_v18, inf  ;;  %v864_v21 = vand.u32 2147483648, %v858_v18  ;;  %vm863_vm4 = vcmp.eq.f32.partialorder %v858_v18, 0.0 }
 0x19b   : > { %v3294_v19 = vpop.eup %3293 }
 0x19c   : > { %v860_v20 = vmul.f32 %v3294_v19, %v858_v18 }
 0x19e   : > { %v862_v22 = vsel %vm861_vm3, %v858_v18, %v860_v20 }
 0x19f   : > { %v865_v23 = vsel %vm863_vm4, %v864_v21, %v862_v22 }
 0x1a0   : > { %3295 = vrcp.f32 %v865_v23 }
 0x1aa   : > { %v3296_v24 = vpop.eup %3295 }
 0x1ab   : > { %v867_v26 = vmul.f32 %v3296_v24, %v852_v5 }
 0x1ad   : > { %v874_v30 = vmul.f32 %v2921_v25, %v867_v26 }
 0x1af   : > { %v881_v32 = vadd.f32 %v2922_v29, %v874_v30 }
 0x1b1   : > { %3029 = vmatmul.mubr.msk.f32.vlgmr.msra.gmra.mrb[0].mxu1 %vm846_vm1, %v881_v32 }
 0x1b2   : > { %3158 = vmatpush3.bf16.msra.mxu1 %v3157_v31  ;;  %3039 = vmatprep.mubr.msk.f32.mxu1 %vm3453_vm2, %v3454_v14 }
 0x1b3   : > { %3159 = vmatprep.subr.bf16.mxu1 %v3452_v11 }
 0x1b6   : > { %3161 = vmatpush3.bf16.msra.mxu1 %v3160_v35 }
 0x1b7   : > { %3162 = vmatprep.subr.bf16.mxu1 %v3452_v11 }
 0x1b9   : > { %3040 = vmatmul.mubr.msk.f32.vlgmr.msra.gmra.mrb[2].mxu1 %vm846_vm1, %v881_v32 }
 0x1ba   : > { %3164 = vmatpush3.bf16.msra.mxu1 %v3163_v38  ;;  %3050 = vmatprep.mubr.msk.f32.mxu1 %vm3453_vm2, %v3454_v14 }
 0x1bb   : > { %3165 = vmatprep.subr.bf16.mxu1 %v3452_v11 }
 0x1be   : > { %3167 = vmatpush3.bf16.msra.mxu1 %v3166_v41 }
 0x1bf   : > { %3053 = vmatprep.subr.mxu1 %v3454_v14 }
 0x1c1   : > { %3051 = vmatmul.mubr.msk.f32.vlgmr.msra.gmra.mrb[4].mxu1 %vm846_vm1, %v881_v32 }
 0x1c2   : > { %3055 = vmatprep.mubr.msk.f32.mxu1 %vm3453_vm2, %v3454_v14 }
 0x284   : > { %v962_v42 = vpop.f32.mrb[0].mxu1 }
 0x285   : > { %v3030_v43 = vpop.f32.mrb[1].mxu1  ;;  %v963_v50 = vadd.f32 %v2923_v48, %v962_v42 }
 0x28c   : > { %v1043_v45 = vpop.f32.mrb[2].mxu1 }
 0x28d   : > { %v1044_v46 = vadd.f32 %v2925_v44, %v1043_v45  ;;  %v3041_v47 = vpop.f32.mrb[3].mxu1 }
 0x28f   : > { %1142 = vrot.lane.b32.xlu0 %v1044_v46, %s3455_s17  ;;  %1136 = vrot.lane.b32.xlu1 %v1044_v46, %s3456_s14 }
 0x293   : > { %1139 = vrot.lane.b32.xlu1 %v1044_v46, %s3457_s25 }
 0x294   : > { %v1124_v49 = vpop.f32.mrb[4].mxu1 }
 0x295   : > { %v3052_v51 = vpop.f32.mrb[5].mxu1  ;;  %v1125_v3 = vadd.f32 %v2927_v2, %v1124_v49 }
 0x297   : > { %1129 = vrot.lane.b32.xlu1 %v963_v50, %s3456_s14 }
 0x29b   : > { %1131 = vrot.lane.b32.xlu1 %v963_v50, %s3457_s25 }
 0x29f   : > { %1133 = vrot.lane.b32.xlu1 %v963_v50, %s3455_s17 }
 0x2c8   : > { %1155 = vxpose.xlu1.b32.start.end [1/1] (short) (narrow) %v1044_v46, 8 }
 0x301   : > { %v1143_v52 = vpop.permute.xlu0 %1142  ;;  %v1137_v53 = vpop.permute.xlu1 %1136 }
 0x302   : > { %1251 = vxpose.xlu1.b32.start.end [1/1] (short) (narrow) %v1143_v52, 8  ;;  %1187 = vxpose.xlu0.b32.start.end [1/1] (short) (narrow) %v1137_v53, 8 }
 0x305   : > { %v1140_v54 = vpop.permute.xlu1 %1139 }
 0x306   : > { %1219 = vxpose.xlu0.b32.start.end [1/1] (short) (narrow) %v1140_v54, 8 }
 0x309   : > { %v1130_v55 = vpop.permute.xlu1 %1129 }
 0x30d   : > { %v1132_v56 = vpop.permute.xlu1 %1131 }
 0x311   : > { %v1134_v57 = vpop.permute.xlu1 %1133 }
 0x348   : > { %v1171_v58 = vpop.trf.xlu1 }
 0x349   : > { %3054 = vmatpush3.msra.mxu1 %v1171_v58 }
 0x34a   : > { %3056 = vmatmul.mubr.msk.f32.vlgmr.msra.gmra.mrb[6].mxu1 %vm1283_vm5, %v963_v50  ;;  %3058 = vmatprep.subr.mxu1 %v3454_v14 }
 0x34b   : > { %3060 = vmatprep.mubr.msk.f32.mxu1 %vm3453_vm2, %v3454_v14 }
 0x382   : > { %v1203_v59 = vpop.trf.xlu0  ;;  %v1267_v60 = vpop.trf.xlu1 }
 0x383   : > { %3059 = vmatpush3.msra.mxu1 %v1203_v59 }
 0x384   : > { %3061 = vmatmul.mubr.msk.f32.vlgmr.msra.gmra.mrb[8].mxu1 %vm1283_vm5, %v1130_v55  ;;  %3068 = vmatprep.subr.mxu1 %v3454_v14 }
 0x385   : > { %3069 = vmatpush3.msra.mxu1 %v1267_v60  ;;  %3070 = vmatprep.mubr.msk.f32.mxu1 %vm3453_vm2, %v3454_v14 }
 0x386   : > { %v1235_v61 = vpop.trf.xlu0  ;;  %3078 = vmatprep.subr.mxu1 %v3454_v14 }
 0x387   : > { %3064 = vmatpush3.msra.mxu0 %v1235_v61 }
 0x388   : > { %3066 = vmatmul.mubr.msk.f32.vlgmr.msra.gmra.mrb[0].mxu0 %vm1283_vm5, %v1132_v56  ;;  %3071 = vmatmul.mubr.msk.f32.vlgmr.msra.gmra.mrb[10].mxu1 %vm1283_vm5, %v1134_v57 }
 0x389   : > { %3073 = vmatprep.subr.mxu0 %v3454_v14  ;;  %3075 = vmatprep.mubr.msk.f32.mxu0 %vm3453_vm2, %v3454_v14 }
 0x38a   : > { %3080 = vmatprep.mubr.msk.f32.mxu1 %vm3453_vm2, %v3454_v14 }
 0x41d   : > { %v1352_v62 = vpop.f32.mrb[6].mxu1 }
 0x41e   : > { %v3057_v63 = vpop.f32.mrb[7].mxu1  ;;  %v1572_v0 = vsel %vm1283_vm5, %v1352_v62, -inf }
 0x41f   : > { %1573 = vmax.xlane.f32.xlu0 %v1572_v0  ;;  %v2330_v63 = vld [vmem:[%s4102_s8 + $0x8] sm:$0xff] }
 0x435   : > { %1146 = vrot.lane.b32.xlu0 %v1125_v3, %s3456_s14  ;;  %s4105_s14 = scalar_lea.vmem %s4022_s11, %s3688_s13 }
 0x457   : > { %v1424_v4 = vpop.f32.mrb[8].mxu1 }
 0x458   : > { %v3062_v5 = vpop.f32.mrb[9].mxu1  ;;  %v1575_v6 = vsel %vm1283_vm5, %v1424_v4, -inf }
 0x459   : > { %1576 = vmax.xlane.f32.xlu1 %v1575_v6  ;;  %v2181_v5 = vlaneseq }
 0x45b   : > { %v1496_v7 = vpop.f32.mrb[0].mxu0  ;;  %v1568_v8 = vpop.f32.mrb[10].mxu1 }
 0x45c   : > { %v3067_v9 = vpop.f32.mrb[1].mxu0  ;;  %v3072_v10 = vpop.f32.mrb[11].mxu1  ;;  %v1578_v12 = vsel %vm1283_vm5, %v1496_v7, -inf  ;;  %v1581_v13 = vsel %vm1283_vm5, %v1568_v8, -inf }
 0x45d   : > { %1579 = vmax.xlane.f32.xlu1 %v1578_v12  ;;  %v2182_v10 = vshrl.u32 %v2181_v5, 7 }
 0x461   : > { %1582 = vmax.xlane.f32.xlu1 %v1581_v13 }
 0x472   : > { %1149 = vrot.lane.b32.xlu1 %v1125_v3, %s3457_s25 }
 0x476   : > { %1152 = vrot.lane.b32.xlu1 %v1125_v3, %s3455_s17 }
 0x4ac   : > { %v1574_v15 = vpop.xlane.xlu0 %1573 }
 0x4ad   : > { %v1584_v16 = vsub.f32 %v1352_v62, %v1574_v15  ;;  %v2329_v62 = vld [vmem:[%s4102_s8] sm:$0xff] }
 0x4ae   : > { %v3169_v0 = vpack.c.bf16 %v2330_v63, %v2329_v62  ;;  %v2943_v63 = vld [vmem:[%s4104_s22] ss:$0 sm:$0xff] }
 0x4af   : > { %v1588_v17 = vmul.f32 1.442695, %v1584_v16 }
 0x4b0   : > { %v1147_v35 = vpop.permute.xlu0 %1146 }
 0x4b1   : > { %3297 = vpow2.f32 %v1588_v17 }
 0x4bb   : > { %v3298_v18 = vpop.eup %3297 }
 0x4bc   : > { %v1596_v19 = vsel %vm1283_vm5, %v3298_v18, 0.0 }
 0x4bd   : > { %1597 = vadd.xlane.f32.xlu0 %v1596_v19 }
 0x4e6   : > { %v1577_v20 = vpop.xlane.xlu1 %1576 }
 0x4e7   : > { %v1585_v21 = vsub.f32 %v1424_v4, %v1577_v20 }
 0x4e9   : > { %v1590_v22 = vmul.f32 1.442695, %v1585_v21 }
 0x4ea   : > { %v1580_v23 = vpop.xlane.xlu1 %1579 }
 0x4eb   : > { %3299 = vpow2.f32 %v1590_v22  ;;  %v1586_v24 = vsub.f32 %v1496_v7, %v1580_v23  ;;  %v3459_v7 = vmov 1934713408  }
 0x4ed   : > { %v1592_v25 = vmul.f32 1.442695, %v1586_v24 }
 0x4ee   : > { %v1583_v26 = vpop.xlane.xlu1 %1582 }
 0x4ef   : > { %3301 = vpow2.f32 %v1592_v25  ;;  %v1587_v27 = vsub.f32 %v1568_v8, %v1583_v26  ;;  %v2211_v8 = vunpack.c.l.s4 %v3459_v7 }
 0x4f1   : > { %v1594_v28 = vmul.f32 1.442695, %v1587_v27  ;;  %v2212_v13 = vunpack.c.0.s8 %v2211_v8 }
 0x4f2   : > { %v1150_v36 = vpop.permute.xlu1 %1149 }
 0x4f3   : > { %3303 = vpow2.f32 %v1594_v28  ;;  %v2215_v21 = vsub.s32 %v2212_v13, %v2182_v10  ;;  %v2452_v13 = vld [vmem:[%s3746_s19 + $0x10] sm:$0xff] }
 0x4f5   : > { %v3300_v29 = vpop.eup %3299 }
 0x4f6   : > { %v1599_v30 = vsel %vm1283_vm5, %v3300_v29, 0.0  ;;  %v1153_v37 = vpop.permute.xlu1 %1152 }
 0x4f7   : > { %1600 = vadd.xlane.f32.xlu1 %v1599_v30  ;;  %v2331_v30 = vld [vmem:[%s4102_s8 + $0x10] sm:$0xff] }
 0x4f9   : > { %v3302_v31 = vpop.eup %3301 }
 0x4fa   : > { %v1602_v32 = vsel %vm1283_vm5, %v3302_v31, 0.0 }
 0x4fb   : > { %1603 = vadd.xlane.f32.xlu0 %v1602_v32 }
 0x4fd   : > { %v3304_v33 = vpop.eup %3303 }
 0x4fe   : > { %v1605_v34 = vsel %vm1283_vm5, %v3304_v33, 0.0 }
 0x4ff   : > { %1606 = vadd.xlane.f32.xlu0 %v1605_v34 }
 0x52a   : > { %1616 = vxpose.xlu1.b32.start.end [1/1] (short) (narrow) %v1125_v3, 8  ;;  %v3458_v3 = vmov 1983009808  }
 0x52b   : > { %v2179_v4 = vunpack.c.l.s4 %v3458_v3 }
 0x52c   : > { %1648 = vxpose.xlu0.b32.start.end [1/1] (short) (narrow) %v1147_v35, 8 }
 0x52d   : > { %v2180_v9 = vunpack.c.0.s8 %v2179_v4 }
 0x52f   : > { %v2183_v15 = vsub.s32 %v2180_v9, %v2182_v10  ;;  %v2450_v10 = vld [vmem:[%s3746_s19] sm:$0xff] }
 0x530   : > { %1680 = vxpose.xlu0.b32.start.end [1/1] (short) (narrow) %v1150_v36, 8 }
 0x534   : > { %1712 = vxpose.xlu0.b32.start.end [1/1] (short) (narrow) %v1153_v37, 8 }
 0x54a   : > { %v1598_v38 = vpop.xlane.xlu0 %1597 }
 0x54b   : > { %3305 = vrcp.f32 %v1598_v38 }
 0x555   : > { %v3306_v39 = vpop.eup %3305 }
 0x556   : > { %v1612_v40 = vmul.f32 %v3306_v39, %v3298_v18 }
 0x558   : > { %3074 = vmatpush3.xpose.msk.msra.mxu0 %vm1283_vm5, %v1612_v40 }
 0x559   : > { %3083 = vmatprep.subr.mxu0 %v3454_v14 }
 0x584   : > { %v1601_v41 = vpop.xlane.xlu1 %1600 }
 0x585   : > { %3307 = vrcp.f32 %v1601_v41 }
 0x588   : > { %v1604_v44 = vpop.xlane.xlu0 %1603 }
 0x589   : > { %3309 = vrcp.f32 %v1604_v44 }
 0x58c   : > { %v1607_v45 = vpop.xlane.xlu0 %1606 }
 0x58d   : > { %3311 = vrcp.f32 %v1607_v45 }
 0x58f   : > { %v3308_v42 = vpop.eup %3307 }
 0x590   : > { %v1613_v43 = vmul.f32 %v3308_v42, %v3300_v29 }
 0x592   : > { %3079 = vmatpush3.xpose.msk.msra.mxu1 %vm1283_vm5, %v1613_v43 }
 0x593   : > { %3088 = vmatprep.subr.mxu1 %v3454_v14  ;;  %v3310_v46 = vpop.eup %3309 }
 0x594   : > { %v1614_v48 = vmul.f32 %v3310_v46, %v3302_v31  ;;  %v2332_v31 = vld [vmem:[%s4102_s8 + $0x18] sm:$0xff] }
 0x595   : > { %v3172_v36 = vpack.c.bf16 %v2332_v31, %v2331_v30  ;;  %v2542_v31 = vld [vmem:[%s3756_s10] sm:$0xff] }
 0x597   : > { %v3312_v47 = vpop.eup %3311 }
 0x598   : > { %v1615_v50 = vmul.f32 %v3312_v47, %v3304_v33 }
 0x5aa   : > { %v1632_v49 = vpop.trf.xlu1 }
 0x5ab   : > { %3076 = vmatmul.mubr.msk.f32.vlgmr.msra.gmra.mrb[2].mxu0 %vm1283_vm5, %v1632_v49 }
 0x5ac   : > { %3084 = vmatpush3.xpose.msk.msra.mxu0 %vm1283_vm5, %v1614_v48  ;;  %v1664_v51 = vpop.trf.xlu0  ;;  %3085 = vmatprep.mubr.msk.f32.mxu0 %vm3453_vm2, %v3454_v14 }
 0x5ad   : > { %3081 = vmatmul.mubr.msk.f32.vlgmr.msra.gmra.mrb[12].mxu1 %vm1283_vm5, %v1664_v51  ;;  %3168 = vmatprep.subr.bf16.mxu0 %v3452_v11 }
 0x5ae   : > { %3089 = vmatpush3.xpose.msk.msra.mxu1 %vm1283_vm5, %v1615_v50  ;;  %3090 = vmatprep.mubr.msk.f32.mxu1 %vm3453_vm2, %v3454_v14 }
 0x5af   : > { %3174 = vmatprep.subr.bf16.mxu1 %v3452_v11 }
 0x5b0   : > { %v1696_v52 = vpop.trf.xlu0 }
 0x5b1   : > { %3086 = vmatmul.mubr.msk.f32.vlgmr.msra.gmra.mrb[4].mxu0 %vm1283_vm5, %v1696_v52 }
 0x5b2   : > { %3101 = vmatprep.mubr.msk.f32.mxu0 %vm3453_vm2, %v3454_v14  ;;  %3170 = vmatpush3.bf16.msra.mxu0 %v3169_v0 }
 0x5b3   : > { %3171 = vmatprep.subr.bf16.mxu0 %v3452_v11 }
 0x5b4   : > { %v1728_v53 = vpop.trf.xlu0 }
 0x5b5   : > { %3091 = vmatmul.mubr.msk.f32.vlgmr.msra.gmra.mrb[14].mxu1 %vm1283_vm5, %v1728_v53 }
 0x5b6   : > { %3112 = vmatprep.mubr.msk.f32.mxu1 %vm3453_vm2, %v3454_v14  ;;  %3173 = vmatpush3.bf16.msra.mxu0 %v3172_v36 }
 0x5b7   : > { %3180 = vmatprep.subr.bf16.mxu0 %v3452_v11 }
 0x67e   : > { %v1816_v54 = vpop.f32.mrb[2].mxu0 }
 0x67f   : > { %2048 = vxpose.xlu1.b32.start.end [1/1] (short) (narrow) %v1816_v54, 8  ;;  %v3077_v55 = vpop.f32.mrb[3].mxu0 }
 0x680   : > { %v1892_v56 = vpop.f32.mrb[12].mxu1 }
 0x681   : > { %v3082_v57 = vpop.f32.mrb[13].mxu1  ;;  %2080 = vxpose.xlu0.b32.start.end [1/1] (short) (narrow) %v1892_v56, 8 }
 0x684   : > { %v1968_v58 = vpop.f32.mrb[4].mxu0 }
 0x685   : > { %v3087_v59 = vpop.f32.mrb[5].mxu0  ;;  %2112 = vxpose.xlu1.b32.start.end [1/1] (short) (narrow) %v1968_v58, 8 }
 0x688   : > { %v2044_v60 = vpop.f32.mrb[14].mxu1 }
 0x689   : > { %2144 = vxpose.xlu0.b32.start.end [1/1] (short) (narrow) %v2044_v60, 8  ;;  %v3092_v61 = vpop.f32.mrb[15].mxu1 }
 0x6ff   : > { %v2064_v2 = vpop.trf.xlu1 }
 0x701   : > { %v2096_v6 = vpop.trf.xlu0 }
 0x705   : > { %v2128_v12 = vpop.trf.xlu1 }
 0x706   : > { %v2176_v16 = vcombine.low %v2064_v2, %v2128_v12  ;;  %v2177_v17 = vcombine.high %v2064_v2, %v2128_v12  ;;  %v2451_v12 = vld [vmem:[%s3746_s19 + $0x8] sm:$0xff] }
 0x708   : > { %v2184_v22 = vrot.slane %v2176_v16, %v2183_v15  ;;  %v2191_v23 = vrot.slane %v2177_v17, %v2183_v15  ;;  %v2453_v16 = vld [vmem:[%s3746_s19 + $0x18] sm:$0xff] }
 0x709   : > { %v2160_v18 = vpop.trf.xlu0 }
 0x70a   : > { %v2192_v19 = vcombine.low %v2096_v6, %v2160_v18  ;;  %v2193_v20 = vcombine.high %v2096_v6, %v2160_v18 }
 0x70c   : > { %v2200_v24 = vrot.slane %v2192_v19, %v2183_v15  ;;  %v2207_v25 = vrot.slane %v2193_v20, %v2183_v15 }
 0x70e   : > { %v2208_v26 = vcombine.low %v2184_v22, %v2200_v24  ;;  %v2209_v27 = vcombine.high %v2184_v22, %v2200_v24  ;;  %v2224_v28 = vcombine.low %v2191_v23, %v2207_v25  ;;  %v2225_v29 = vcombine.high %v2191_v23, %v2207_v25 }
 0x710   : > { %v2216_v32 = vrot.slane %v2208_v26, %v2215_v21  ;;  %v2223_v33 = vrot.slane %v2209_v27, %v2215_v21  ;;  %v2232_v34 = vrot.slane %v2224_v28, %v2215_v21  ;;  %v2239_v35 = vrot.slane %v2225_v29, %v2215_v21  ;;  %v2945_v26 = vld [vmem:[%s4105_s14] ss:$0 sm:$0xff] }
 0x711   : > { %v2946_v28 = vld [vmem:[%s819_s7] ss:$0 sm:$0xff] }
 0x712   : > { %v2244_v37 = vcombine.low %v2216_v32, %v2223_v33  ;;  %v2941_v38 = vcombine.high %v2216_v32, %v2223_v33  ;;  %v2260_v39 = vcombine.low %v2232_v34, %v2239_v35  ;;  %v2942_v40 = vcombine.high %v2232_v34, %v2239_v35  ;;  %v2543_v32 = vld [vmem:[%s3756_s10 + $0x8] sm:$0xff]  ;;  %v2544_v34 = vld [vmem:[%s3756_s10 + $0x10] sm:$0xff]  ;;  %v2545_v35 = vld [vmem:[%s3756_s10 + $0x18] sm:$0xff] }
 0x713   : > { %v3181_v33 = vpack.c.bf16 %v2543_v32, %v2542_v31  ;;  %v3184_v36 = vpack.c.bf16 %v2545_v35, %v2544_v34 }
 0x714   : > { %v2251_v41 = vrot.slane %v2244_v37, %v2183_v15  ;;  %v2259_v42 = vrot.slane %v2941_v38, %v2183_v15  ;;  %v2267_v43 = vrot.slane %v2260_v39, %v2183_v15  ;;  %v2275_v44 = vrot.slane %v2942_v40, %v2183_v15  ;;  %v2546_v37 = vld [vmem:[%s3756_s10 + $0x20] sm:$0xff]  ;;  %v2547_v38 = vld [vmem:[%s3756_s10 + $0x28] sm:$0xff]  ;;  %v2548_v40 = vld [vmem:[%s3756_s10 + $0x30] sm:$0xff] }
 0x715   : > { %v3175_v15 = vpack.c.bf16 %v2451_v12, %v2450_v10  ;;  %v3187_v39 = vpack.c.bf16 %v2547_v38, %v2546_v37 }
 0x716   : > { %v2277_v45 = vcombine.high %v2251_v41, %v2259_v42  ;;  %v2293_v46 = vcombine.high %v2267_v43, %v2275_v44  ;;  %v2276_v47 = vcombine.low %v2251_v41, %v2259_v42  ;;  %v2292_v48 = vcombine.low %v2267_v43, %v2275_v44  ;;  %v2549_v41 = vld [vmem:[%s3756_s10 + $0x38] sm:$0xff]  ;;  %v2550_v43 = vld [vmem:[%s3756_s10 + $0x40] sm:$0xff]  ;;  %v2551_v44 = vld [vmem:[%s3756_s10 + $0x48] sm:$0xff] }
 0x717   : > { %3176 = vmatpush3.bf16.msra.mxu1 %v3175_v15  ;;  %v3190_v42 = vpack.c.bf16 %v2549_v41, %v2548_v40 }
 0x718   : > { %v2291_v49 = vrot.slane %v2277_v45, %v2215_v21  ;;  %v2307_v50 = vrot.slane %v2293_v46, %v2215_v21  ;;  %v2284_v51 = vrot.slane %v2276_v47, %v2215_v21  ;;  %v2300_v52 = vrot.slane %v2292_v48, %v2215_v21  ;;  %3177 = vmatprep.subr.bf16.mxu1 %v3452_v11  ;;  %v2552_v46 = vld [vmem:[%s3756_s10 + $0x50] sm:$0xff]  ;;  %v2553_v47 = vld [vmem:[%s3756_s10 + $0x58] sm:$0xff] }
 0x719   : > { %v3193_v45 = vpack.c.bf16 %v2551_v44, %v2550_v43  ;;  %v3196_v48 = vpack.c.bf16 %v2553_v47, %v2552_v46 }
 0x71a   : > { %v2310_v53 = vcombine.low %v2291_v49, %v2307_v50  ;;  %v2309_v54 = vcombine.high %v2284_v51, %v2300_v52  ;;  %v2308_v55 = vcombine.low %v2284_v51, %v2300_v52  ;;  %v2311_v56 = vcombine.high %v2291_v49, %v2307_v50  ;;  %v2554_v49 = vld [vmem:[%s3756_s10 + $0x60] sm:$0xff]  ;;  %v2555_v50 = vld [vmem:[%s3756_s10 + $0x68] sm:$0xff]  ;;  %v2556_v52 = vld [vmem:[%s3756_s10 + $0x70] sm:$0xff] }
 0x71b   : > { %v3199_v51 = vpack.c.bf16 %v2555_v50, %v2554_v49 }
 0x71c   : > { %2317 = vrot.lane.b32.xlu0 %v2310_v53, %s3460_s9  ;;  %2313 = vrot.lane.b32.xlu1 %v2309_v54, %s3461_s26  ;;  %v2557_v53 = vld [vmem:[%s3756_s10 + $0x78] sm:$0xff] }
 0x71d   : > { %v3202_v54 = vpack.c.bf16 %v2557_v53, %v2556_v52 }
 0x720   : > { %2321 = vrot.lane.b32.xlu1 %v2311_v56, %s3462_s20 }
 0x78e   : > { %v2314_v57 = vpop.permute.xlu1 %2313  ;;  %v2318_v58 = vpop.permute.xlu0 %2317 }
 0x78f   : > { %v2324_v59 = vsel %vm1283_vm5, %v2308_v55, %v2314_v57  ;;  %v2947_v55 = vld [vmem:[%s827_s3] ss:$0 sm:$0xff] }
 0x790   : > { %v2326_v61 = vsel %vm2325_vm6, %v2324_v59, %v2318_v58 }
 0x792   : > { %v2322_v60 = vpop.permute.xlu1 %2321 }
 0x793   : > { %v2328_v62 = vsel %vm2327_vm7, %v2326_v61, %v2322_v60 }
 0x794   : > { %3102 = vmatmul.mubr.msk.f32.vlgmr.msra.gmra.mrb[6].mxu0 %vm846_vm1, %v2328_v62 }
 0x795   : > { %3147 = vmatprep.mubr.msk.f32.mxu0 %vm3453_vm2, %v3454_v14  ;;  %3182 = vmatpush3.bf16.msra.mxu0 %v3181_v33 }
 0x796   : > { %3183 = vmatprep.subr.bf16.mxu0 %v3452_v11 }
 0x799   : > { %3185 = vmatpush3.bf16.msra.mxu0 %v3184_v36 }
 0x79a   : > { %3186 = vmatprep.subr.bf16.mxu0 %v3452_v11 }
 0x79d   : > { %3188 = vmatpush3.bf16.msra.mxu0 %v3187_v39 }
 0x79e   : > { %3189 = vmatprep.subr.bf16.mxu0 %v3452_v11 }
 0x7a1   : > { %3191 = vmatpush3.bf16.msra.mxu0 %v3190_v42 }
 0x7a2   : > { %3192 = vmatprep.subr.bf16.mxu0 %v3452_v11 }
 0x7a5   : > { %3194 = vmatpush3.bf16.msra.mxu0 %v3193_v45 }
 0x7a6   : > { %3195 = vmatprep.subr.bf16.mxu0 %v3452_v11 }
 0x7a9   : > { %3197 = vmatpush3.bf16.msra.mxu0 %v3196_v48 }
 0x7aa   : > { %3198 = vmatprep.subr.bf16.mxu0 %v3452_v11 }
 0x7ad   : > { %3200 = vmatpush3.bf16.msra.mxu0 %v3199_v51 }
 0x7ae   : > { %3201 = vmatprep.subr.bf16.mxu0 %v3452_v11 }
 0x7b1   : > { %3203 = vmatpush3.bf16.msra.mxu0 %v3202_v54 }
 0x867   : > { %v2409_v0 = vpop.f32.mrb[6].mxu0 }
 0x868   : > { %v2410_v2 = vadd.f32 %v2943_v63, %v2409_v0  ;;  %v3103_v3 = vpop.f32.mrb[7].mxu0  ;;  %v2950_v0 = vld [vmem:[%s835_s21] ss:$0 sm:$0xff] }
 0x86a   : > { %v3898_v4 = vadd.f32 %v2410_v2, %v3765_v1  ;;  %v3178_v1 = vpack.c.bf16 %v2453_v16, %v2452_v13 }
 0x86c   : > { %v2416_v5 = vsel %vm846_vm1, %v3898_v4, 0.0  ;;  %3179 = vmatpush3.bf16.msra.mxu1 %v3178_v1 }
 0x86d   : > { %2417 = vadd.xlane.f32.xlu1 %v2416_v5 }
 0x8fa   : > { %v2418_v6 = vpop.xlane.xlu1 %2417 }
 0x8fb   : > { %v2419_v7 = vmul.f32 0.03125, %v2418_v6 }
 0x8fd   : > { %v2420_v14 = vsub.f32 %v3898_v4, %v2419_v7 }
 0x8ff   : > { %v2421_v8 = vmul.f32 %v2420_v14, %v2420_v14 }
 0x901   : > { %v2422_v9 = vsel %vm846_vm1, %v2421_v8, 0.0 }
 0x902   : > { %2423 = vadd.xlane.f32.xlu0 %v2422_v9 }
 0x98f   : > { %v2424_v17 = vpop.xlane.xlu0 %2423 }
 0x990   : > { %v2425_v18 = vmul.f32 0.03125, %v2424_v17 }
 0x992   : > { %v2426_v19 = vadd.f32 1e-12, %v2425_v18 }
 0x994   : > { %3313 = vrsqrt.f32 %v2426_v19  ;;  %vm2429_vm8 = vcmp.eq.f32.partialorder %v2426_v19, inf  ;;  %v2432_v22 = vand.u32 2147483648, %v2426_v19  ;;  %vm2431_vm9 = vcmp.eq.f32.partialorder %v2426_v19, 0.0 }
 0x99e   : > { %v3314_v20 = vpop.eup %3313 }
 0x99f   : > { %v2428_v21 = vmul.f32 %v3314_v20, %v2426_v19 }
 0x9a1   : > { %v2430_v23 = vsel %vm2429_vm8, %v2426_v19, %v2428_v21 }
 0x9a2   : > { %v2433_v24 = vsel %vm2431_vm9, %v2432_v22, %v2430_v23 }
 0x9a3   : > { %3315 = vrcp.f32 %v2433_v24 }
 0x9ad   : > { %v3316_v25 = vpop.eup %3315 }
 0x9ae   : > { %v2435_v27 = vmul.f32 %v3316_v25, %v2420_v14 }
 0x9b0   : > { %v2442_v29 = vmul.f32 %v2945_v26, %v2435_v27 }
 0x9b2   : > { %v2449_v30 = vadd.f32 %v2946_v28, %v2442_v29 }
 0x9b4   : > { %3113 = vmatmul.mubr.msk.f32.vlgmr.msra.gmra.mrb[16].mxu1 %vm846_vm1, %v2449_v30 }
 0xa87   : > { %v2530_v56 = vpop.f32.mrb[16].mxu1 }
 0xa88   : > { %v2531_v57 = vadd.f32 %v2947_v55, %v2530_v56  ;;  %v3114_v58 = vpop.f32.mrb[17].mxu1 }
 0xa8a   : > { %v2949_v59 = vmul.f32 -1.702, %v2531_v57 }
 0xa8c   : > { %v2536_v60 = vmul.f32 1.442695, %v2949_v59 }
 0xa8e   : > { %3317 = vpow2.f32 %v2536_v60 }
 0xa98   : > { %v3318_v61 = vpop.eup %3317 }
 0xa99   : > { %v2538_v62 = vadd.f32 1.0, %v3318_v61 }
 0xa9b   : > { %3319 = vrcp.f32 %v2538_v62 }
 0xaa5   : > { %v3320_v11 = vpop.eup %3319 }
 0xaa6   : > { %v2541_v63 = vmul.f32 %v3320_v11, %v2531_v57 }
 0xaa8   : > { %3148 = vmatmul.mubr.f32.vlgmr.msra.gmra.mrb[8].mxu0 %v2541_v63 }
 0xb7a   : > { %2640 = sbr.rel (%p2951_p11) target bundleno = 2945 (0xb81), region = 100 }
 0xb7b   : > { %v2631_v2 = vpop.f32.mrb[8].mxu0 }
 0xb7c   : > { %v2632_v3 = vadd.f32 %v2950_v0, %v2631_v2  ;;  %v3149_v5 = vpop.f32.mrb[9].mxu0 }
 0xb7e   : > { %v2635_v6 = vadd.f32 %v2632_v3, %v3898_v4 }
 0xb80   : > { %2636 = vst.msk [vmem:[#allocation2] sm:$0xff] %vm846_vm1, %v2635_v6  ;;  %2641 = vst.msk [vmem:[%s3762_s28] sm:$0xff] (!%p2951_p11), %vm846_vm1, %v2635_v6 }
 0xb81 PF: > { %s4108_s3 = sld [smem:[#allocation12_spill]]  ;;  %s4109_s15 = sld [smem:[#allocation21_spill]] }
 0xb82   : > { %s4110_s4 = sld [smem:[#allocation18_spill]]  ;;  %s4111_s8 = sld [smem:[#allocation36_spill]] }
 0xb83   : > { %s2656_s26 = sshll.u32 %s3762_s28, 4  ;;  %s3463_s27 = smov [#allocation6]   ;;  %s2657_s26 = int_to_ptr.vmem [resolvable:$true] %s2656_s26 }
 0xb84   : > { %s3351_s18 = scalar_lea.vmem %s2657_s26, 128  ;;  %s3355_s30 = sshll.u32 %s3463_s27, 4  ;;  %s3356_s30 = int_to_ptr.vmem [resolvable:$false] %s3355_s30 }
 0xb85   : > { %p3352_p0 = scmp.ne.s32.totalorder %s2657_s26, %s3351_s18  ;;  %s3357_s16 = scalar_lea.vmem %s3356_s30, 256 }
 0xb86   : > { %p3358_p6 = scmp.lt.s32.totalorder %s2657_s26, %s3356_s30  ;;  %p3359_p3 = scmp.lt.s32.totalorder %s3357_s16, %s3351_s18 }
 0xb87   : > { %s2953_s13 = sshll.u32 %s4108_s3, 7  ;;  %s2643_s20 = scalar_lea.sflag [#allocation5], %s4109_s15 }
 0xb88   : > { %s3962_s9 = scalar_lea.hbm %s4111_s8, %s2953_s13  ;;  %p4112_p7 = scmp.ne.s32.totalorder %s4110_s4, 0 }
 0xb89   : > { %p3360_p8 = por %p3359_p3, %p3358_p6 }
 0xb8a   : > { %p3353_p13 = pnand %p3352_p0, %p4112_p7 }
 0xb8c   : > { %p3354_p4 = pneg %p3353_p13 }
 0xb8e   : > { %p3361_p12 = pnand %p3360_p8, %p3354_p4 }
 0xb90   : > { %3364 = shalt.err (!%p3361_p12)
}
 0xb91   : > { %s3365_s28 = scalar_lea.hbm %s3962_s9, 128  ;;  %s3369_s17 = scalar_lea.hbm %s4111_s8, 256 }
 0xb92   : > { %p3366_p1 = scmp.ne.s32.totalorder %s3962_s9, %s3365_s28  ;;  %p3370_p10 = scmp.lt.u32.totalorder %s3962_s9, %s4111_s8 }
 0xb93   : > { %p3371_p9 = scmp.lt.u32.totalorder %s3369_s17, %s3365_s28  ;;  %p3373_p0 = scmp.lt.u32.totalorder %s3365_s28, %s3962_s9 }
 0xb94   : > { %p3367_p2 = pnand %p3366_p1, %p4112_p7 }
 0xb95   : > { %p3372_p11 = por %p3371_p9, %p3370_p10 }
 0xb96   : > { %p3368_p5 = pneg %p3367_p2 }
 0xb97   : > { %p3374_p13 = por %p3373_p0, %p3372_p11 }
 0xb99   : > { %p3375_p4 = pnand %p3374_p13, %p3368_p5 }
 0xb9b   : > { %3378 = shalt.err (!%p3375_p4)
}
 0xb9c   : > { %3206 = dma.vmem_to_hbm [thread:$0]  (%p4112_p7), %s2657_s26, 128, %s3962_s9, %s2643_s20  }
 0xb9d PF: > { %s4113_s1 = sld [smem:[#allocation15_spill]]  ;;  %s4114_s7 = sld [smem:[#allocation9_spill]] }
 0xb9e   : > { %s4115_s29 = sld [smem:[#allocation19_spill]] }
 0xba3   : > { %p3217_p6 = scmp.ge.s32.totalorder %s4113_s1, 2  ;;  %s2668_s24 = sand.u32 1, %s4114_s7  }
 0xba4   : > { %p4116_p3 = scmp.ne.s32.totalorder %s4115_s29, 0  ;;  %s2669_s10 = scalar_lea.sflag [#allocation5], %s2668_s24 }
 0xba6   : > { %p3213_p8 = pnand %p3217_p6, %p4116_p3 }
 0xba8   : > { %3416 = dma.done.wait (!%p3213_p8), %s2669_s10, 128  }
 0xba9   : > { %3418 = vsyncadd (!%p3213_p8), %s2669_s10, 4294967168  ;;  %s33_s30 = sadd.s32 1, %s4113_s1   ;;  %s4117_s24 = sld [smem:[#allocation10_spill]] }
 0xbaa   : > { %p30_p12 = scmp.ge.s32.totalorder %s33_s30, 6   ;;  %s4118_s25 = sld [smem:[#allocation11_spill]] }
 0xbab   : > { %s4119_s26 = sld [smem:[#allocation20_spill]]  ;;  %s4120_s27 = sld [smem:[#allocation13_spill]] }
 0xbac   : > { %s4121_s28 = sld [smem:[#allocation14_spill]]  ;;  %s4122_s29 = sld [smem:[#allocation16_spill]] }
 0xbad   : > { %s4123_s0 = sld [smem:[#allocation17_spill]]  ;;  %32 = sbr.rel (!%p30_p12) target bundleno = 22 (0x16), region = 189 }
 0xbb4   :  { %2674 = vsyncpa [#allocation4], 1 }
 0xbb5   :  { %2676 = vsyncpa [#allocation4 + $0x1], 1 }
 0xbb6   :  { %2677 = vsyncpa [#allocation5], 1 }
 0xbb7   :  { %2679 = vsyncpa [#allocation5 + $0x1], 1 }

</bundles_post_ra>
